<compile_context>
chip_gen: v7x
topology: tpu7x:2x2x1
jax: 0.10.0
libtpu: 0.0.40
codegen_flags: <defaults>
</compile_context>

<pallas_src>
import functools

import jax
import jax.numpy as jnp
from jax import lax
from jax.experimental import pallas as pl
from jax.experimental.pallas import tpu as pltpu

EPS = 1e-5            # PyTorch nn.LayerNorm default eps
F32 = jnp.float32
BF16 = jnp.bfloat16


# --------------------------------- in-kernel helpers ---------------------------------

def _ln(x, g, b):
    mu = jnp.mean(x, axis=-1, keepdims=True)
    var = jnp.mean(jnp.square(x - mu), axis=-1, keepdims=True)
    return (x - mu) * lax.rsqrt(var + EPS) * g + b


def _softmax(x):
    # approx reciprocal -> divide moves to the EUP slot (small rel. error, fine for inference)
    m = jnp.max(x, axis=-1, keepdims=True)
    e = jnp.exp(x - m)
    return e * pl.reciprocal(jnp.sum(e, axis=-1, keepdims=True), approx=True)


def _gelu(x):
    # tanh-approx GELU: transcendental lands on the EUP slot instead of ~10 VALU ops/element.
    # TODO(synk): PyTorch nn.GELU default is the exact erf form (difference ~1e-3, OK for inference).
    c = 0.7978845608028654  # sqrt(2/pi)
    return 0.5 * x * (1.0 + jnp.tanh(c * (x + 0.044715 * x * x * x)))


# ------------------------------------- the kernel -------------------------------------

def _forward_kernel(
    patches_ref, pos_ref,                                   # (1,N,pdim), (N,D)
    eg1_ref, eb1_ref, ew_ref, ewb_ref, eg2_ref, eb2_ref,    # patch embedding
    lag_ref, lab_ref, wq_ref, wk_ref, wv_ref, wo_ref, bo_ref,   # attention (stacked over layers)
    lfg_ref, lfb_ref, w1_ref, b1_ref, w2_ref, b2_ref,       # feedforward (stacked over layers)
    mq_ref, mg_ref, mb_ref,                                  # PatchMerger
    fg_ref, fb_ref, hw_ref, hb_ref,                          # trailing LN + classifier
    out_ref,                                                 # (1,1,num_classes)
    *, depth, heads, dim_head, merge_index, attn_scale, merger_scale,
):
    # ---- to_patch_embedding: LN(patch_dim) -> Linear -> LN(dim); then += pos_emb (dropout = id)
    x = patches_ref[0].astype(F32)                                       # (N, patch_dim)
    x = _ln(x, eg1_ref[...], eb1_ref[...])
    x = jnp.dot(x.astype(BF16), ew_ref[...], preferred_element_type=F32) + ewb_ref[...]
    x = _ln(x, eg2_ref[...], eb2_ref[...])
    x = x + pos_ref[...].astype(F32)                                     # (N, D)

    # ---- Transformer_PM (static unroll over layers; token count shrinks after the PatchMerger)
    for l in range(depth):
        n_tok, dim = x.shape

        # attention sub-block: pre-LN -> per-head q/k/v (heads batched on the MXU) -> softmax
        #                      -> per-head out-projection, summed over heads -> residual
        xn = _ln(x, lag_ref[l], lab_ref[l])
        xh = jnp.broadcast_to(xn.astype(BF16), (heads, n_tok, dim))      # (H, n, D)
        q = jnp.einsum("hnk,hkd->hnd", xh, wq_ref[l], preferred_element_type=F32)
        k = jnp.einsum("hnk,hkd->hnd", xh, wk_ref[l], preferred_element_type=F32)
        v = jnp.einsum("hnk,hkd->hnd", xh, wv_ref[l], preferred_element_type=F32)
        s = jnp.einsum("hnd,hmd->hnm", q.astype(BF16), k.astype(BF16),
                       preferred_element_type=F32) * attn_scale          # (H, n, n)
        p = _softmax(s)
        o = jnp.einsum("hnm,hmd->hnd", p.astype(BF16), v.astype(BF16),
                       preferred_element_type=F32)                        # (H, n, dh)
        oh = jnp.einsum("hnd,hdk->hnk", o.astype(BF16), wo_ref[l],
                        preferred_element_type=F32)                       # (H, n, D)
        x = x + jnp.sum(oh, axis=0) + bo_ref[l]

        # feedforward sub-block: pre-LN -> Linear -> GELU -> Linear -> residual
        xn2 = _ln(x, lfg_ref[l], lfb_ref[l])
        hid = _gelu(jnp.dot(xn2.astype(BF16), w1_ref[l], preferred_element_type=F32)
                    + b1_ref[l])
        x = x + jnp.dot(hid.astype(BF16), w2_ref[l], preferred_element_type=F32) + b2_ref[l]

        # PatchMerger after layer `merge_index`
        if l == merge_index:
            xm = _ln(x, mg_ref[...], mb_ref[...]).astype(BF16)            # (n, D)
            sim = lax.dot_general(mq_ref[...], xm, (((1,), (1,)), ((), ())),
                                  preferred_element_type=F32) * merger_scale   # (M, n)
            attn = _softmax(sim)
            x = jnp.dot(attn.astype(BF16), xm, preferred_element_type=F32)     # (M, D)

    # ---- trailing transformer LayerNorm, then mlp_head: mean over tokens -> Linear
    xn = _ln(x, fg_ref[...], fb_ref[...])
    pooled = jnp.mean(xn, axis=0, keepdims=True)                          # (1, D)
    logits = jnp.dot(pooled.astype(BF16), hw_ref[...], preferred_element_type=F32) + hb_ref[...]
    out_ref[0] = logits.astype(out_ref.dtype)


# --------------------------------- pallas_call wrapper --------------------------------

def patch_merger_forward(img, params, *, patch_size, merge_index):
    """NCHW image -> logits.  Everything after the einops rearrange runs in one Pallas kernel."""
    B, C, H, W = img.shape
    ps = patch_size
    hh, ww = H // ps, W // ps
    n = hh * ww
    # Rearrange 'b c (h p1) (w p2) -> b (h w) (p1 p2 c)'  -- pure-JAX layout glue
    patches = (img.reshape(B, C, hh, ps, ww, ps)
                  .transpose(0, 2, 4, 3, 5, 1)
                  .reshape(B, n, ps * ps * C))

    pdim = patches.shape[2]
    dim = params["e_w"].shape[1]
    depth, heads, _, dim_head = params["wq"].shape
    mlp_dim = params["w1"].shape[2]
    m_tok = params["mq"].shape[0]
    ncls = params["h_w"].shape[1]
    inner = heads * dim_head

    r2 = lambda a: a.reshape(1, -1)     # (d,)   -> (1, d)
    r3 = lambda a: a[:, None, :]        # (L, d) -> (L, 1, d)

    ins = [
        patches,
        params["pos_emb"][:n],
        r2(params["e_ln1_g"]), r2(params["e_ln1_b"]),
        params["e_w"], r2(params["e_b"]),
        r2(params["e_ln2_g"]), r2(params["e_ln2_b"]),
        r3(params["a_ln_g"]), r3(params["a_ln_b"]),
        params["wq"], params["wk"], params["wv"],
        params["wo"], r3(params["bo"]),
        r3(params["f_ln_g"]), r3(params["f_ln_b"]),
        params["w1"], r3(params["b1"]),
        params["w2"], r3(params["b2"]),
        params["mq"], r2(params["m_ln_g"]), r2(params["m_ln_b"]),
        r2(params["fin_ln_g"]), r2(params["fin_ln_b"]),
        params["h_w"], r2(params["h_b"]),
    ]

    def _full(a):                        # full-array, constant-index spec for weights/params
        nd = a.ndim
        return pl.BlockSpec(a.shape, lambda b, _nd=nd: (0,) * _nd)

    in_specs = ([pl.BlockSpec((1, n, pdim), lambda b: (b, 0, 0))]
                + [_full(a) for a in ins[1:]])

    # advisory cost estimate: lets XLA overlap the weight DMAs with neighbouring ops
    tok, flops, trans = n, 2 * n * pdim * dim, 0
    for l in range(depth):
        flops += 2 * tok * dim * 3 * inner              # q/k/v projections
        flops += 2 * heads * tok * tok * dim_head * 2   # scores + attn @ v
        flops += 2 * tok * inner * dim                  # output projection
        flops += 2 * tok * dim * mlp_dim * 2            # MLP
        trans += heads * tok * tok + tok * mlp_dim      # softmax exp + gelu tanh
        if l == merge_index:
            flops += 2 * m_tok * tok * dim * 2
            trans += m_tok * tok
            tok = m_tok
    flops += 2 * dim * ncls
    bytes_acc = sum(int(a.size) * a.dtype.itemsize for a in ins) + B * ncls * 4
    cost = pl.CostEstimate(flops=B * flops, transcendentals=B * trans,
                           bytes_accessed=int(bytes_acc))

    kernel = functools.partial(
        _forward_kernel, depth=depth, heads=heads, dim_head=dim_head,
        merge_index=merge_index, attn_scale=dim_head ** -0.5, merger_scale=dim ** -0.5)

    out = pl.pallas_call(
        kernel,
        out_shape=jax.ShapeDtypeStruct((B, 1, ncls), F32),   # 3-D so the block equals full minor dims
        grid=(B,),
        in_specs=in_specs,
        out_specs=pl.BlockSpec((1, 1, ncls), lambda b: (b, 0, 0)),
        compiler_params=pltpu.CompilerParams(dimension_semantics=("parallel",)),
        cost_estimate=cost,
    )(*ins)
    return out[:, 0, :]


# --------------------------------------- params ----------------------------------------

def init_params(key, *, patch_dim, dim, depth, heads, dim_head, mlp_dim,
                num_classes, num_patches, num_tokens_out):
    ks = iter(jax.random.split(key, 16))

    def nrm(shape, s=0.02, dt=BF16):
        # matmul weights live in bf16 (MXU-native, half the HBM/VMEM bytes)
        return (s * jax.random.normal(next(ks), shape, dtype=F32)).astype(dt)

    return {
        # to_patch_embedding
        "e_ln1_g": jnp.ones((patch_dim,), F32), "e_ln1_b": jnp.zeros((patch_dim,), F32),
        "e_w": nrm((patch_dim, dim)), "e_b": jnp.zeros((dim,), F32),
        "e_ln2_g": jnp.ones((dim,), F32), "e_ln2_b": jnp.zeros((dim,), F32),
        "pos_emb": nrm((num_patches + 1, dim), 1.0, F32),
        # transformer layers, stacked along a leading depth axis
        "a_ln_g": jnp.ones((depth, dim), F32), "a_ln_b": jnp.zeros((depth, dim), F32),
        # to_qkv (no bias) split per head -> (depth, heads, dim, dim_head); to_out per head
        "wq": nrm((depth, heads, dim, dim_head)),
        "wk": nrm((depth, heads, dim, dim_head)),
        "wv": nrm((depth, heads, dim, dim_head)),
        "wo": nrm((depth, heads, dim_head, dim)),
        "bo": jnp.zeros((depth, dim), F32),
        "f_ln_g": jnp.ones((depth, dim), F32), "f_ln_b": jnp.zeros((depth, dim), F32),
        "w1": nrm((depth, dim, mlp_dim)), "b1": jnp.zeros((depth, mlp_dim), F32),
        "w2": nrm((depth, mlp_dim, dim)), "b2": jnp.zeros((depth, dim), F32),
        # PatchMerger
        "mq": nrm((num_tokens_out, dim), 1.0),
        "m_ln_g": jnp.ones((dim,), F32), "m_ln_b": jnp.zeros((dim,), F32),
        # trailing transformer LayerNorm + classification head
        "fin_ln_g": jnp.ones((dim,), F32), "fin_ln_b": jnp.zeros((dim,), F32),
        "h_w": nrm((dim, num_classes)), "h_b": jnp.zeros((num_classes,), F32),
    }


# ---------------------------------------- main -----------------------------------------

if __name__ == "__main__":
    # small, module-consistent configuration
    image_size, patch_size, channels = 16, 4, 3
    dim, depth, heads, dim_head, mlp_dim = 32, 2, 2, 16, 64
    num_classes = 10
    num_tokens_out = 8              # vit-pytorch PatchMerger default
    patch_merge_layers = None       # -> defaults to depth // 2
    merge_index = (patch_merge_layers if patch_merge_layers is not None else depth // 2) - 1

    num_patches = (image_size // patch_size) * (image_size // patch_size)
    patch_dim = channels * patch_size * patch_size

    key = jax.random.PRNGKey(0)
    k_img, k_par = jax.random.split(key)
    img = jax.random.normal(k_img, (2, channels, image_size, image_size), dtype=F32)
    params = init_params(k_par, patch_dim=patch_dim, dim=dim, depth=depth, heads=heads,
                         dim_head=dim_head, mlp_dim=mlp_dim, num_classes=num_classes,
                         num_patches=num_patches, num_tokens_out=num_tokens_out)

    fwd = jax.jit(functools.partial(patch_merger_forward,
                                    patch_size=patch_size, merge_index=merge_index))
    out = fwd(img, params)
    jax.block_until_ready(out)
    assert out.shape == (2, num_classes), out.shape
    assert bool(jnp.all(jnp.isfinite(out)))
    print("KERNEL_OK")
</pallas_src>

<mosaic_0001>
module attributes {stable_mosaic.version = 11 : i64} {
  func.func @_forward_kernel(%arg0: i32, %arg1: memref<1x16x48xf32, #tpu.memory_space<vmem>>, %arg2: memref<16x32xf32, #tpu.memory_space<vmem>>, %arg3: memref<1x48xf32, #tpu.memory_space<vmem>>, %arg4: memref<1x48xf32, #tpu.memory_space<vmem>>, %arg5: memref<48x32xbf16, #tpu.memory_space<vmem>>, %arg6: memref<1x32xf32, #tpu.memory_space<vmem>>, %arg7: memref<1x32xf32, #tpu.memory_space<vmem>>, %arg8: memref<1x32xf32, #tpu.memory_space<vmem>>, %arg9: memref<2x1x32xf32, #tpu.memory_space<vmem>>, %arg10: memref<2x1x32xf32, #tpu.memory_space<vmem>>, %arg11: memref<2x2x32x16xbf16, #tpu.memory_space<vmem>>, %arg12: memref<2x2x32x16xbf16, #tpu.memory_space<vmem>>, %arg13: memref<2x2x32x16xbf16, #tpu.memory_space<vmem>>, %arg14: memref<2x2x16x32xbf16, #tpu.memory_space<vmem>>, %arg15: memref<2x1x32xf32, #tpu.memory_space<vmem>>, %arg16: memref<2x1x32xf32, #tpu.memory_space<vmem>>, %arg17: memref<2x1x32xf32, #tpu.memory_space<vmem>>, %arg18: memref<2x32x64xbf16, #tpu.memory_space<vmem>>, %arg19: memref<2x1x64xf32, #tpu.memory_space<vmem>>, %arg20: memref<2x64x32xbf16, #tpu.memory_space<vmem>>, %arg21: memref<2x1x32xf32, #tpu.memory_space<vmem>>, %arg22: memref<8x32xbf16, #tpu.memory_space<vmem>>, %arg23: memref<1x32xf32, #tpu.memory_space<vmem>>, %arg24: memref<1x32xf32, #tpu.memory_space<vmem>>, %arg25: memref<1x32xf32, #tpu.memory_space<vmem>>, %arg26: memref<1x32xf32, #tpu.memory_space<vmem>>, %arg27: memref<32x10xbf16, #tpu.memory_space<vmem>>, %arg28: memref<1x10xf32, #tpu.memory_space<vmem>>, %arg29: memref<1x1x10xf32, #tpu.memory_space<vmem>>) attributes {dimension_semantics = [#tpu.dimension_semantics<parallel>], iteration_bounds = array<i64: 2>, scalar_prefetch = 0 : i64, scratch_operands = 0 : i64, tpu.core_type = #tpu.core_type<tc>, window_params = [{transform_indices = @transform_0, window_bounds = array<i64: 1, 16, 48>}, {pipeline_mode = #tpu.pipeline_mode<synchronous>, transform_indices = @transform_1, window_bounds = array<i64: 16, 32>}, {pipeline_mode = #tpu.pipeline_mode<synchronous>, transform_indices = @transform_2, window_bounds = array<i64: 1, 48>}, {pipeline_mode = #tpu.pipeline_mode<synchronous>, transform_indices = @transform_3, window_bounds = array<i64: 1, 48>}, {pipeline_mode = #tpu.pipeline_mode<synchronous>, transform_indices = @transform_4, window_bounds = array<i64: 48, 32>}, {pipeline_mode = #tpu.pipeline_mode<synchronous>, transform_indices = @transform_5, window_bounds = array<i64: 1, 32>}, {pipeline_mode = #tpu.pipeline_mode<synchronous>, transform_indices = @transform_6, window_bounds = array<i64: 1, 32>}, {pipeline_mode = #tpu.pipeline_mode<synchronous>, transform_indices = @transform_7, window_bounds = array<i64: 1, 32>}, {pipeline_mode = #tpu.pipeline_mode<synchronous>, transform_indices = @transform_8, window_bounds = array<i64: 2, 1, 32>}, {pipeline_mode = #tpu.pipeline_mode<synchronous>, transform_indices = @transform_9, window_bounds = array<i64: 2, 1, 32>}, {pipeline_mode = #tpu.pipeline_mode<synchronous>, transform_indices = @transform_10, window_bounds = array<i64: 2, 2, 32, 16>}, {pipeline_mode = #tpu.pipeline_mode<synchronous>, transform_indices = @transform_11, window_bounds = array<i64: 2, 2, 32, 16>}, {pipeline_mode = #tpu.pipeline_mode<synchronous>, transform_indices = @transform_12, window_bounds = array<i64: 2, 2, 32, 16>}, {pipeline_mode = #tpu.pipeline_mode<synchronous>, transform_indices = @transform_13, window_bounds = array<i64: 2, 2, 16, 32>}, {pipeline_mode = #tpu.pipeline_mode<synchronous>, transform_indices = @transform_14, window_bounds = array<i64: 2, 1, 32>}, {pipeline_mode = #tpu.pipeline_mode<synchronous>, transform_indices = @transform_15, window_bounds = array<i64: 2, 1, 32>}, {pipeline_mode = #tpu.pipeline_mode<synchronous>, transform_indices = @transform_16, window_bounds = array<i64: 2, 1, 32>}, {pipeline_mode = #tpu.pipeline_mode<synchronous>, transform_indices = @transform_17, window_bounds = array<i64: 2, 32, 64>}, {pipeline_mode = #tpu.pipeline_mode<synchronous>, transform_indices = @transform_18, window_bounds = array<i64: 2, 1, 64>}, {pipeline_mode = #tpu.pipeline_mode<synchronous>, transform_indices = @transform_19, window_bounds = array<i64: 2, 64, 32>}, {pipeline_mode = #tpu.pipeline_mode<synchronous>, transform_indices = @transform_20, window_bounds = array<i64: 2, 1, 32>}, {pipeline_mode = #tpu.pipeline_mode<synchronous>, transform_indices = @transform_21, window_bounds = array<i64: 8, 32>}, {pipeline_mode = #tpu.pipeline_mode<synchronous>, transform_indices = @transform_22, window_bounds = array<i64: 1, 32>}, {pipeline_mode = #tpu.pipeline_mode<synchronous>, transform_indices = @transform_23, window_bounds = array<i64: 1, 32>}, {pipeline_mode = #tpu.pipeline_mode<synchronous>, transform_indices = @transform_24, window_bounds = array<i64: 1, 32>}, {pipeline_mode = #tpu.pipeline_mode<synchronous>, transform_indices = @transform_25, window_bounds = array<i64: 1, 32>}, {pipeline_mode = #tpu.pipeline_mode<synchronous>, transform_indices = @transform_26, window_bounds = array<i64: 32, 10>}, {pipeline_mode = #tpu.pipeline_mode<synchronous>, transform_indices = @transform_27, window_bounds = array<i64: 1, 10>}, {transform_indices = @transform_28, window_bounds = array<i64: 1, 1, 10>}]} {
    %c0 = arith.constant 0 : index
    %c0_0 = arith.constant 0 : index
    %c0_1 = arith.constant 0 : index
    %0 = vector.load %arg1[%c0, %c0_0, %c0_1] : memref<1x16x48xf32, #tpu.memory_space<vmem>>, vector<1x16x48xf32>
    %1 = vector.shape_cast %0 : vector<1x16x48xf32> to vector<16x48xf32>
    %c0_2 = arith.constant 0 : index
    %c0_3 = arith.constant 0 : index
    %2 = vector.load %arg3[%c0_2, %c0_3] : memref<1x48xf32, #tpu.memory_space<vmem>>, vector<1x48xf32>
    %c0_4 = arith.constant 0 : index
    %c0_5 = arith.constant 0 : index
    %3 = vector.load %arg4[%c0_4, %c0_5] : memref<1x48xf32, #tpu.memory_space<vmem>>, vector<1x48xf32>
    %cst = arith.constant dense<0.000000e+00> : vector<16xf32>
    %4 = vector.multi_reduction <add>, %1, %cst [1] : vector<16x48xf32> to vector<16xf32>
    %5 = vector.shape_cast %4 : vector<16xf32> to vector<16x1xf32>
    %cst_6 = arith.constant 4.800000e+01 : f32
    %6 = vector.broadcast %cst_6 : f32 to vector<16x1xf32>
    %7 = arith.divf %5, %6 : vector<16x1xf32>
    %8 = vector.broadcast %7 : vector<16x1xf32> to vector<16x48xf32>
    %9 = arith.subf %1, %8 : vector<16x48xf32>
    %10 = arith.mulf %9, %9 : vector<16x48xf32>
    %cst_7 = arith.constant dense<0.000000e+00> : vector<16xf32>
    %11 = vector.multi_reduction <add>, %10, %cst_7 [1] : vector<16x48xf32> to vector<16xf32>
    %12 = vector.shape_cast %11 : vector<16xf32> to vector<16x1xf32>
    %cst_8 = arith.constant 4.800000e+01 : f32
    %13 = vector.broadcast %cst_8 : f32 to vector<16x1xf32>
    %14 = arith.divf %12, %13 : vector<16x1xf32>
    %15 = vector.broadcast %7 : vector<16x1xf32> to vector<16x48xf32>
    %16 = arith.subf %1, %15 : vector<16x48xf32>
    %cst_9 = arith.constant 9.99999974E-6 : f32
    %17 = vector.broadcast %cst_9 : f32 to vector<16x1xf32>
    %18 = arith.addf %14, %17 : vector<16x1xf32>
    %19 = math.rsqrt %18 : vector<16x1xf32>
    %20 = vector.broadcast %19 : vector<16x1xf32> to vector<16x48xf32>
    %21 = arith.mulf %16, %20 : vector<16x48xf32>
    %22 = vector.broadcast %2 : vector<1x48xf32> to vector<16x48xf32>
    %23 = arith.mulf %21, %22 : vector<16x48xf32>
    %24 = vector.broadcast %3 : vector<1x48xf32> to vector<16x48xf32>
    %25 = arith.addf %23, %24 : vector<16x48xf32>
    %26 = arith.truncf %25 : vector<16x48xf32> to vector<16x48xbf16>
    %c0_10 = arith.constant 0 : index
    %c0_11 = arith.constant 0 : index
    %27 = vector.load %arg5[%c0_10, %c0_11] : memref<48x32xbf16, #tpu.memory_space<vmem>>, vector<48x32xbf16>
    %cst_12 = arith.constant dense<0.000000e+00> : vector<16x32xf32>
    %28 = tpu.matmul %26, %27, %cst_12 {dimension_numbers = #tpu.dot_dimension_numbers<[1], [0], [0], [1], [0, 0, 1, 1], [], []>} : vector<16x48xbf16>, vector<48x32xbf16>, vector<16x32xf32> -> vector<16x32xf32>
    %c0_13 = arith.constant 0 : index
    %c0_14 = arith.constant 0 : index
    %29 = vector.load %arg6[%c0_13, %c0_14] : memref<1x32xf32, #tpu.memory_space<vmem>>, vector<1x32xf32>
    %30 = vector.broadcast %29 : vector<1x32xf32> to vector<16x32xf32>
    %31 = arith.addf %28, %30 : vector<16x32xf32>
    %c0_15 = arith.constant 0 : index
    %c0_16 = arith.constant 0 : index
    %32 = vector.load %arg7[%c0_15, %c0_16] : memref<1x32xf32, #tpu.memory_space<vmem>>, vector<1x32xf32>
    %c0_17 = arith.constant 0 : index
    %c0_18 = arith.constant 0 : index
    %33 = vector.load %arg8[%c0_17, %c0_18] : memref<1x32xf32, #tpu.memory_space<vmem>>, vector<1x32xf32>
    %cst_19 = arith.constant dense<0.000000e+00> : vector<16xf32>
    %34 = vector.multi_reduction <add>, %31, %cst_19 [1] : vector<16x32xf32> to vector<16xf32>
    %35 = vector.shape_cast %34 : vector<16xf32> to vector<16x1xf32>
    %cst_20 = arith.constant 3.200000e+01 : f32
    %36 = vector.broadcast %cst_20 : f32 to vector<16x1xf32>
    %37 = arith.divf %35, %36 : vector<16x1xf32>
    %38 = vector.broadcast %37 : vector<16x1xf32> to vector<16x32xf32>
    %39 = arith.subf %31, %38 : vector<16x32xf32>
    %40 = arith.mulf %39, %39 : vector<16x32xf32>
    %cst_21 = arith.constant dense<0.000000e+00> : vector<16xf32>
    %41 = vector.multi_reduction <add>, %40, %cst_21 [1] : vector<16x32xf32> to vector<16xf32>
    %42 = vector.shape_cast %41 : vector<16xf32> to vector<16x1xf32>
    %cst_22 = arith.constant 3.200000e+01 : f32
    %43 = vector.broadcast %cst_22 : f32 to vector<16x1xf32>
    %44 = arith.divf %42, %43 : vector<16x1xf32>
    %45 = vector.broadcast %37 : vector<16x1xf32> to vector<16x32xf32>
    %46 = arith.subf %31, %45 : vector<16x32xf32>
    %cst_23 = arith.constant 9.99999974E-6 : f32
    %47 = vector.broadcast %cst_23 : f32 to vector<16x1xf32>
    %48 = arith.addf %44, %47 : vector<16x1xf32>
    %49 = math.rsqrt %48 : vector<16x1xf32>
    %50 = vector.broadcast %49 : vector<16x1xf32> to vector<16x32xf32>
    %51 = arith.mulf %46, %50 : vector<16x32xf32>
    %52 = vector.broadcast %32 : vector<1x32xf32> to vector<16x32xf32>
    %53 = arith.mulf %51, %52 : vector<16x32xf32>
    %54 = vector.broadcast %33 : vector<1x32xf32> to vector<16x32xf32>
    %55 = arith.addf %53, %54 : vector<16x32xf32>
    %c0_24 = arith.constant 0 : index
    %c0_25 = arith.constant 0 : index
    %56 = vector.load %arg2[%c0_24, %c0_25] : memref<16x32xf32, #tpu.memory_space<vmem>>, vector<16x32xf32>
    %57 = arith.addf %55, %56 : vector<16x32xf32>
    %c0_26 = arith.constant 0 : index
    %c0_27 = arith.constant 0 : index
    %c0_28 = arith.constant 0 : index
    %58 = vector.load %arg9[%c0_26, %c0_27, %c0_28] : memref<2x1x32xf32, #tpu.memory_space<vmem>>, vector<1x1x32xf32>
    %59 = vector.shape_cast %58 : vector<1x1x32xf32> to vector<1x32xf32>
    %c0_29 = arith.constant 0 : index
    %c0_30 = arith.constant 0 : index
    %c0_31 = arith.constant 0 : index
    %60 = vector.load %arg10[%c0_29, %c0_30, %c0_31] : memref<2x1x32xf32, #tpu.memory_space<vmem>>, vector<1x1x32xf32>
    %61 = vector.shape_cast %60 : vector<1x1x32xf32> to vector<1x32xf32>
    %cst_32 = arith.constant dense<0.000000e+00> : vector<16xf32>
    %62 = vector.multi_reduction <add>, %57, %cst_32 [1] : vector<16x32xf32> to vector<16xf32>
    %63 = vector.shape_cast %62 : vector<16xf32> to vector<16x1xf32>
    %cst_33 = arith.constant 3.200000e+01 : f32
    %64 = vector.broadcast %cst_33 : f32 to vector<16x1xf32>
    %65 = arith.divf %63, %64 : vector<16x1xf32>
    %66 = vector.broadcast %65 : vector<16x1xf32> to vector<16x32xf32>
    %67 = arith.subf %57, %66 : vector<16x32xf32>
    %68 = arith.mulf %67, %67 : vector<16x32xf32>
    %cst_34 = arith.constant dense<0.000000e+00> : vector<16xf32>
    %69 = vector.multi_reduction <add>, %68, %cst_34 [1] : vector<16x32xf32> to vector<16xf32>
    %70 = vector.shape_cast %69 : vector<16xf32> to vector<16x1xf32>
    %cst_35 = arith.constant 3.200000e+01 : f32
    %71 = vector.broadcast %cst_35 : f32 to vector<16x1xf32>
    %72 = arith.divf %70, %71 : vector<16x1xf32>
    %73 = vector.broadcast %65 : vector<16x1xf32> to vector<16x32xf32>
    %74 = arith.subf %57, %73 : vector<16x32xf32>
    %cst_36 = arith.constant 9.99999974E-6 : f32
    %75 = vector.broadcast %cst_36 : f32 to vector<16x1xf32>
    %76 = arith.addf %72, %75 : vector<16x1xf32>
    %77 = math.rsqrt %76 : vector<16x1xf32>
    %78 = vector.broadcast %77 : vector<16x1xf32> to vector<16x32xf32>
    %79 = arith.mulf %74, %78 : vector<16x32xf32>
    %80 = vector.broadcast %59 : vector<1x32xf32> to vector<16x32xf32>
    %81 = arith.mulf %79, %80 : vector<16x32xf32>
    %82 = vector.broadcast %61 : vector<1x32xf32> to vector<16x32xf32>
    %83 = arith.addf %81, %82 : vector<16x32xf32>
    %84 = arith.truncf %83 : vector<16x32xf32> to vector<16x32xbf16>
    %85 = vector.shape_cast %84 : vector<16x32xbf16> to vector<1x16x32xbf16>
    %86 = vector.broadcast %85 : vector<1x16x32xbf16> to vector<2x16x32xbf16>
    %c0_37 = arith.constant 0 : index
    %c0_38 = arith.constant 0 : index
    %c0_39 = arith.constant 0 : index
    %c0_40 = arith.constant 0 : index
    %87 = vector.load %arg11[%c0_37, %c0_38, %c0_39, %c0_40] : memref<2x2x32x16xbf16, #tpu.memory_space<vmem>>, vector<1x2x32x16xbf16>
    %88 = vector.shape_cast %87 : vector<1x2x32x16xbf16> to vector<2x32x16xbf16>
    "tpu.trace_start"() <{level = 10 : i32, message = "hnk,hkd->hnd"}> : () -> ()
    %cst_41 = arith.constant dense<0.000000e+00> : vector<2x16x16xf32>
    %89 = tpu.matmul %86, %88, %cst_41 {dimension_numbers = #tpu.dot_dimension_numbers<[2], [1], [1], [2], [0, 0, 0, 1, 1, 2], [0], [0]>} : vector<2x16x32xbf16>, vector<2x32x16xbf16>, vector<2x16x16xf32> -> vector<2x16x16xf32>
    "tpu.trace_stop"() : () -> ()
    %c0_42 = arith.constant 0 : index
    %c0_43 = arith.constant 0 : index
    %c0_44 = arith.constant 0 : index
    %c0_45 = arith.constant 0 : index
    %90 = vector.load %arg12[%c0_42, %c0_43, %c0_44, %c0_45] : memref<2x2x32x16xbf16, #tpu.memory_space<vmem>>, vector<1x2x32x16xbf16>
    %91 = vector.shape_cast %90 : vector<1x2x32x16xbf16> to vector<2x32x16xbf16>
    "tpu.trace_start"() <{level = 10 : i32, message = "hnk,hkd->hnd"}> : () -> ()
    %cst_46 = arith.constant dense<0.000000e+00> : vector<2x16x16xf32>
    %92 = tpu.matmul %86, %91, %cst_46 {dimension_numbers = #tpu.dot_dimension_numbers<[2], [1], [1], [2], [0, 0, 0, 1, 1, 2], [0], [0]>} : vector<2x16x32xbf16>, vector<2x32x16xbf16>, vector<2x16x16xf32> -> vector<2x16x16xf32>
    "tpu.trace_stop"() : () -> ()
    %c0_47 = arith.constant 0 : index
    %c0_48 = arith.constant 0 : index
    %c0_49 = arith.constant 0 : index
    %c0_50 = arith.constant 0 : index
    %93 = vector.load %arg13[%c0_47, %c0_48, %c0_49, %c0_50] : memref<2x2x32x16xbf16, #tpu.memory_space<vmem>>, vector<1x2x32x16xbf16>
    %94 = vector.shape_cast %93 : vector<1x2x32x16xbf16> to vector<2x32x16xbf16>
    "tpu.trace_start"() <{level = 10 : i32, message = "hnk,hkd->hnd"}> : () -> ()
    %cst_51 = arith.constant dense<0.000000e+00> : vector<2x16x16xf32>
    %95 = tpu.matmul %86, %94, %cst_51 {dimension_numbers = #tpu.dot_dimension_numbers<[2], [1], [1], [2], [0, 0, 0, 1, 1, 2], [0], [0]>} : vector<2x16x32xbf16>, vector<2x32x16xbf16>, vector<2x16x16xf32> -> vector<2x16x16xf32>
    "tpu.trace_stop"() : () -> ()
    %96 = arith.truncf %89 : vector<2x16x16xf32> to vector<2x16x16xbf16>
    %97 = arith.truncf %92 : vector<2x16x16xf32> to vector<2x16x16xbf16>
    "tpu.trace_start"() <{level = 10 : i32, message = "hnd,hmd->hnm"}> : () -> ()
    %cst_52 = arith.constant dense<0.000000e+00> : vector<2x16x16xf32>
    %98 = tpu.matmul %96, %97, %cst_52 {dimension_numbers = #tpu.dot_dimension_numbers<[2], [2], [1], [1], [0, 0, 0, 1, 1, 1], [0], [0]>} : vector<2x16x16xbf16>, vector<2x16x16xbf16>, vector<2x16x16xf32> -> vector<2x16x16xf32>
    "tpu.trace_stop"() : () -> ()
    %cst_53 = arith.constant 2.500000e-01 : f32
    %99 = vector.broadcast %cst_53 : f32 to vector<2x16x16xf32>
    %100 = arith.mulf %98, %99 : vector<2x16x16xf32>
    %cst_54 = arith.constant dense<0xFF800000> : vector<2x16xf32>
    %101 = vector.multi_reduction <maximumf>, %100, %cst_54 [2] : vector<2x16x16xf32> to vector<2x16xf32>
    %102 = vector.shape_cast %101 : vector<2x16xf32> to vector<2x16x1xf32>
    %103 = vector.broadcast %102 : vector<2x16x1xf32> to vector<2x16x16xf32>
    %104 = arith.subf %100, %103 : vector<2x16x16xf32>
    %105 = math.exp %104 : vector<2x16x16xf32>
    %cst_55 = arith.constant dense<0.000000e+00> : vector<2x16xf32>
    %106 = vector.multi_reduction <add>, %105, %cst_55 [2] : vector<2x16x16xf32> to vector<2x16xf32>
    %107 = vector.shape_cast %106 : vector<2x16xf32> to vector<2x16x1xf32>
    %108 = tpu.reciprocal %107 {approx = true} : vector<2x16x1xf32> -> vector<2x16x1xf32>
    %109 = vector.broadcast %108 : vector<2x16x1xf32> to vector<2x16x16xf32>
    %110 = arith.mulf %105, %109 : vector<2x16x16xf32>
    %111 = arith.truncf %110 : vector<2x16x16xf32> to vector<2x16x16xbf16>
    %112 = arith.truncf %95 : vector<2x16x16xf32> to vector<2x16x16xbf16>
    "tpu.trace_start"() <{level = 10 : i32, message = "hnm,hmd->hnd"}> : () -> ()
    %cst_56 = arith.constant dense<0.000000e+00> : vector<2x16x16xf32>
    %113 = tpu.matmul %111, %112, %cst_56 {dimension_numbers = #tpu.dot_dimension_numbers<[2], [1], [1], [2], [0, 0, 0, 1, 1, 2], [0], [0]>} : vector<2x16x16xbf16>, vector<2x16x16xbf16>, vector<2x16x16xf32> -> vector<2x16x16xf32>
    "tpu.trace_stop"() : () -> ()
    %114 = arith.truncf %113 : vector<2x16x16xf32> to vector<2x16x16xbf16>
    %c0_57 = arith.constant 0 : index
    %c0_58 = arith.constant 0 : index
    %c0_59 = arith.constant 0 : index
    %c0_60 = arith.constant 0 : index
    %115 = vector.load %arg14[%c0_57, %c0_58, %c0_59, %c0_60] : memref<2x2x16x32xbf16, #tpu.memory_space<vmem>>, vector<1x2x16x32xbf16>
    %116 = vector.shape_cast %115 : vector<1x2x16x32xbf16> to vector<2x16x32xbf16>
    "tpu.trace_start"() <{level = 10 : i32, message = "hnd,hdk->hnk"}> : () -> ()
    %cst_61 = arith.constant dense<0.000000e+00> : vector<2x16x32xf32>
    %117 = tpu.matmul %114, %116, %cst_61 {dimension_numbers = #tpu.dot_dimension_numbers<[2], [1], [1], [2], [0, 0, 0, 1, 1, 2], [0], [0]>} : vector<2x16x16xbf16>, vector<2x16x32xbf16>, vector<2x16x32xf32> -> vector<2x16x32xf32>
    "tpu.trace_stop"() : () -> ()
    %cst_62 = arith.constant dense<0.000000e+00> : vector<16x32xf32>
    %118 = vector.multi_reduction <add>, %117, %cst_62 [0] : vector<2x16x32xf32> to vector<16x32xf32>
    %119 = arith.addf %57, %118 : vector<16x32xf32>
    %c0_63 = arith.constant 0 : index
    %c0_64 = arith.constant 0 : index
    %c0_65 = arith.constant 0 : index
    %120 = vector.load %arg15[%c0_63, %c0_64, %c0_65] : memref<2x1x32xf32, #tpu.memory_space<vmem>>, vector<1x1x32xf32>
    %121 = vector.shape_cast %120 : vector<1x1x32xf32> to vector<1x32xf32>
    %122 = vector.broadcast %121 : vector<1x32xf32> to vector<16x32xf32>
    %123 = arith.addf %119, %122 : vector<16x32xf32>
    %c0_66 = arith.constant 0 : index
    %c0_67 = arith.constant 0 : index
    %c0_68 = arith.constant 0 : index
    %124 = vector.load %arg16[%c0_66, %c0_67, %c0_68] : memref<2x1x32xf32, #tpu.memory_space<vmem>>, vector<1x1x32xf32>
    %125 = vector.shape_cast %124 : vector<1x1x32xf32> to vector<1x32xf32>
    %c0_69 = arith.constant 0 : index
    %c0_70 = arith.constant 0 : index
    %c0_71 = arith.constant 0 : index
    %126 = vector.load %arg17[%c0_69, %c0_70, %c0_71] : memref<2x1x32xf32, #tpu.memory_space<vmem>>, vector<1x1x32xf32>
    %127 = vector.shape_cast %126 : vector<1x1x32xf32> to vector<1x32xf32>
    %cst_72 = arith.constant dense<0.000000e+00> : vector<16xf32>
    %128 = vector.multi_reduction <add>, %123, %cst_72 [1] : vector<16x32xf32> to vector<16xf32>
    %129 = vector.shape_cast %128 : vector<16xf32> to vector<16x1xf32>
    %cst_73 = arith.constant 3.200000e+01 : f32
    %130 = vector.broadcast %cst_73 : f32 to vector<16x1xf32>
    %131 = arith.divf %129, %130 : vector<16x1xf32>
    %132 = vector.broadcast %131 : vector<16x1xf32> to vector<16x32xf32>
    %133 = arith.subf %123, %132 : vector<16x32xf32>
    %134 = arith.mulf %133, %133 : vector<16x32xf32>
    %cst_74 = arith.constant dense<0.000000e+00> : vector<16xf32>
    %135 = vector.multi_reduction <add>, %134, %cst_74 [1] : vector<16x32xf32> to vector<16xf32>
    %136 = vector.shape_cast %135 : vector<16xf32> to vector<16x1xf32>
    %cst_75 = arith.constant 3.200000e+01 : f32
    %137 = vector.broadcast %cst_75 : f32 to vector<16x1xf32>
    %138 = arith.divf %136, %137 : vector<16x1xf32>
    %139 = vector.broadcast %131 : vector<16x1xf32> to vector<16x32xf32>
    %140 = arith.subf %123, %139 : vector<16x32xf32>
    %cst_76 = arith.constant 9.99999974E-6 : f32
    %141 = vector.broadcast %cst_76 : f32 to vector<16x1xf32>
    %142 = arith.addf %138, %141 : vector<16x1xf32>
    %143 = math.rsqrt %142 : vector<16x1xf32>
    %144 = vector.broadcast %143 : vector<16x1xf32> to vector<16x32xf32>
    %145 = arith.mulf %140, %144 : vector<16x32xf32>
    %146 = vector.broadcast %125 : vector<1x32xf32> to vector<16x32xf32>
    %147 = arith.mulf %145, %146 : vector<16x32xf32>
    %148 = vector.broadcast %127 : vector<1x32xf32> to vector<16x32xf32>
    %149 = arith.addf %147, %148 : vector<16x32xf32>
    %150 = arith.truncf %149 : vector<16x32xf32> to vector<16x32xbf16>
    %c0_77 = arith.constant 0 : index
    %c0_78 = arith.constant 0 : index
    %c0_79 = arith.constant 0 : index
    %151 = vector.load %arg18[%c0_77, %c0_78, %c0_79] : memref<2x32x64xbf16, #tpu.memory_space<vmem>>, vector<1x32x64xbf16>
    %152 = vector.shape_cast %151 : vector<1x32x64xbf16> to vector<32x64xbf16>
    %cst_80 = arith.constant dense<0.000000e+00> : vector<16x64xf32>
    %153 = tpu.matmul %150, %152, %cst_80 {dimension_numbers = #tpu.dot_dimension_numbers<[1], [0], [0], [1], [0, 0, 1, 1], [], []>} : vector<16x32xbf16>, vector<32x64xbf16>, vector<16x64xf32> -> vector<16x64xf32>
    %c0_81 = arith.constant 0 : index
    %c0_82 = arith.constant 0 : index
    %c0_83 = arith.constant 0 : index
    %154 = vector.load %arg19[%c0_81, %c0_82, %c0_83] : memref<2x1x64xf32, #tpu.memory_space<vmem>>, vector<1x1x64xf32>
    %155 = vector.shape_cast %154 : vector<1x1x64xf32> to vector<1x64xf32>
    %156 = vector.broadcast %155 : vector<1x64xf32> to vector<16x64xf32>
    %157 = arith.addf %153, %156 : vector<16x64xf32>
    %cst_84 = arith.constant 5.000000e-01 : f32
    %158 = vector.broadcast %cst_84 : f32 to vector<16x64xf32>
    %159 = arith.mulf %158, %157 : vector<16x64xf32>
    %cst_85 = arith.constant 4.471500e-02 : f32
    %160 = vector.broadcast %cst_85 : f32 to vector<16x64xf32>
    %161 = arith.mulf %160, %157 : vector<16x64xf32>
    %162 = arith.mulf %161, %157 : vector<16x64xf32>
    %163 = arith.mulf %162, %157 : vector<16x64xf32>
    %164 = arith.addf %157, %163 : vector<16x64xf32>
    %cst_86 = arith.constant 0.797884583 : f32
    %165 = vector.broadcast %cst_86 : f32 to vector<16x64xf32>
    %166 = arith.mulf %165, %164 : vector<16x64xf32>
    %167 = math.tanh %166 : vector<16x64xf32>
    %cst_87 = arith.constant 1.000000e+00 : f32
    %168 = vector.broadcast %cst_87 : f32 to vector<16x64xf32>
    %169 = arith.addf %168, %167 : vector<16x64xf32>
    %170 = arith.mulf %159, %169 : vector<16x64xf32>
    %171 = arith.truncf %170 : vector<16x64xf32> to vector<16x64xbf16>
    %c0_88 = arith.constant 0 : index
    %c0_89 = arith.constant 0 : index
    %c0_90 = arith.constant 0 : index
    %172 = vector.load %arg20[%c0_88, %c0_89, %c0_90] : memref<2x64x32xbf16, #tpu.memory_space<vmem>>, vector<1x64x32xbf16>
    %173 = vector.shape_cast %172 : vector<1x64x32xbf16> to vector<64x32xbf16>
    %cst_91 = arith.constant dense<0.000000e+00> : vector<16x32xf32>
    %174 = tpu.matmul %171, %173, %cst_91 {dimension_numbers = #tpu.dot_dimension_numbers<[1], [0], [0], [1], [0, 0, 1, 1], [], []>} : vector<16x64xbf16>, vector<64x32xbf16>, vector<16x32xf32> -> vector<16x32xf32>
    %175 = arith.addf %123, %174 : vector<16x32xf32>
    %c0_92 = arith.constant 0 : index
    %c0_93 = arith.constant 0 : index
    %c0_94 = arith.constant 0 : index
    %176 = vector.load %arg21[%c0_92, %c0_93, %c0_94] : memref<2x1x32xf32, #tpu.memory_space<vmem>>, vector<1x1x32xf32>
    %177 = vector.shape_cast %176 : vector<1x1x32xf32> to vector<1x32xf32>
    %178 = vector.broadcast %177 : vector<1x32xf32> to vector<16x32xf32>
    %179 = arith.addf %175, %178 : vector<16x32xf32>
    %c0_95 = arith.constant 0 : index
    %c0_96 = arith.constant 0 : index
    %180 = vector.load %arg23[%c0_95, %c0_96] : memref<1x32xf32, #tpu.memory_space<vmem>>, vector<1x32xf32>
    %c0_97 = arith.constant 0 : index
    %c0_98 = arith.constant 0 : index
    %181 = vector.load %arg24[%c0_97, %c0_98] : memref<1x32xf32, #tpu.memory_space<vmem>>, vector<1x32xf32>
    %cst_99 = arith.constant dense<0.000000e+00> : vector<16xf32>
    %182 = vector.multi_reduction <add>, %179, %cst_99 [1] : vector<16x32xf32> to vector<16xf32>
    %183 = vector.shape_cast %182 : vector<16xf32> to vector<16x1xf32>
    %cst_100 = arith.constant 3.200000e+01 : f32
    %184 = vector.broadcast %cst_100 : f32 to vector<16x1xf32>
    %185 = arith.divf %183, %184 : vector<16x1xf32>
    %186 = vector.broadcast %185 : vector<16x1xf32> to vector<16x32xf32>
    %187 = arith.subf %179, %186 : vector<16x32xf32>
    %188 = arith.mulf %187, %187 : vector<16x32xf32>
    %cst_101 = arith.constant dense<0.000000e+00> : vector<16xf32>
    %189 = vector.multi_reduction <add>, %188, %cst_101 [1] : vector<16x32xf32> to vector<16xf32>
    %190 = vector.shape_cast %189 : vector<16xf32> to vector<16x1xf32>
    %cst_102 = arith.constant 3.200000e+01 : f32
    %191 = vector.broadcast %cst_102 : f32 to vector<16x1xf32>
    %192 = arith.divf %190, %191 : vector<16x1xf32>
    %193 = vector.broadcast %185 : vector<16x1xf32> to vector<16x32xf32>
    %194 = arith.subf %179, %193 : vector<16x32xf32>
    %cst_103 = arith.constant 9.99999974E-6 : f32
    %195 = vector.broadcast %cst_103 : f32 to vector<16x1xf32>
    %196 = arith.addf %192, %195 : vector<16x1xf32>
    %197 = math.rsqrt %196 : vector<16x1xf32>
    %198 = vector.broadcast %197 : vector<16x1xf32> to vector<16x32xf32>
    %199 = arith.mulf %194, %198 : vector<16x32xf32>
    %200 = vector.broadcast %180 : vector<1x32xf32> to vector<16x32xf32>
    %201 = arith.mulf %199, %200 : vector<16x32xf32>
    %202 = vector.broadcast %181 : vector<1x32xf32> to vector<16x32xf32>
    %203 = arith.addf %201, %202 : vector<16x32xf32>
    %204 = arith.truncf %203 : vector<16x32xf32> to vector<16x32xbf16>
    %c0_104 = arith.constant 0 : index
    %c0_105 = arith.constant 0 : index
    %205 = vector.load %arg22[%c0_104, %c0_105] : memref<8x32xbf16, #tpu.memory_space<vmem>>, vector<8x32xbf16>
    %cst_106 = arith.constant dense<0.000000e+00> : vector<8x16xf32>
    %206 = tpu.matmul %205, %204, %cst_106 {dimension_numbers = #tpu.dot_dimension_numbers<[1], [1], [0], [0], [0, 0, 1, 0], [], []>} : vector<8x32xbf16>, vector<16x32xbf16>, vector<8x16xf32> -> vector<8x16xf32>
    %cst_107 = arith.constant 0.176776692 : f32
    %207 = vector.broadcast %cst_107 : f32 to vector<8x16xf32>
    %208 = arith.mulf %206, %207 : vector<8x16xf32>
    %cst_108 = arith.constant dense<0xFF800000> : vector<8xf32>
    %209 = vector.multi_reduction <maximumf>, %208, %cst_108 [1] : vector<8x16xf32> to vector<8xf32>
    %210 = vector.shape_cast %209 : vector<8xf32> to vector<8x1xf32>
    %211 = vector.broadcast %210 : vector<8x1xf32> to vector<8x16xf32>
    %212 = arith.subf %208, %211 : vector<8x16xf32>
    %213 = math.exp %212 : vector<8x16xf32>
    %cst_109 = arith.constant dense<0.000000e+00> : vector<8xf32>
    %214 = vector.multi_reduction <add>, %213, %cst_109 [1] : vector<8x16xf32> to vector<8xf32>
    %215 = vector.shape_cast %214 : vector<8xf32> to vector<8x1xf32>
    %216 = tpu.reciprocal %215 {approx = true} : vector<8x1xf32> -> vector<8x1xf32>
    %217 = vector.broadcast %216 : vector<8x1xf32> to vector<8x16xf32>
    %218 = arith.mulf %213, %217 : vector<8x16xf32>
    %219 = arith.truncf %218 : vector<8x16xf32> to vector<8x16xbf16>
    %cst_110 = arith.constant dense<0.000000e+00> : vector<8x32xf32>
    %220 = tpu.matmul %219, %204, %cst_110 {dimension_numbers = #tpu.dot_dimension_numbers<[1], [0], [0], [1], [0, 0, 1, 1], [], []>} : vector<8x16xbf16>, vector<16x32xbf16>, vector<8x32xf32> -> vector<8x32xf32>
    %c1 = arith.constant 1 : index
    %c0_111 = arith.constant 0 : index
    %c0_112 = arith.constant 0 : index
    %221 = vector.load %arg9[%c1, %c0_111, %c0_112] : memref<2x1x32xf32, #tpu.memory_space<vmem>>, vector<1x1x32xf32>
    %222 = vector.shape_cast %221 : vector<1x1x32xf32> to vector<1x32xf32>
    %c1_113 = arith.constant 1 : index
    %c0_114 = arith.constant 0 : index
    %c0_115 = arith.constant 0 : index
    %223 = vector.load %arg10[%c1_113, %c0_114, %c0_115] : memref<2x1x32xf32, #tpu.memory_space<vmem>>, vector<1x1x32xf32>
    %224 = vector.shape_cast %223 : vector<1x1x32xf32> to vector<1x32xf32>
    %cst_116 = arith.constant dense<0.000000e+00> : vector<8xf32>
    %225 = vector.multi_reduction <add>, %220, %cst_116 [1] : vector<8x32xf32> to vector<8xf32>
    %226 = vector.shape_cast %225 : vector<8xf32> to vector<8x1xf32>
    %cst_117 = arith.constant 3.200000e+01 : f32
    %227 = vector.broadcast %cst_117 : f32 to vector<8x1xf32>
    %228 = arith.divf %226, %227 : vector<8x1xf32>
    %229 = vector.broadcast %228 : vector<8x1xf32> to vector<8x32xf32>
    %230 = arith.subf %220, %229 : vector<8x32xf32>
    %231 = arith.mulf %230, %230 : vector<8x32xf32>
    %cst_118 = arith.constant dense<0.000000e+00> : vector<8xf32>
    %232 = vector.multi_reduction <add>, %231, %cst_118 [1] : vector<8x32xf32> to vector<8xf32>
    %233 = vector.shape_cast %232 : vector<8xf32> to vector<8x1xf32>
    %cst_119 = arith.constant 3.200000e+01 : f32
    %234 = vector.broadcast %cst_119 : f32 to vector<8x1xf32>
    %235 = arith.divf %233, %234 : vector<8x1xf32>
    %236 = vector.broadcast %228 : vector<8x1xf32> to vector<8x32xf32>
    %237 = arith.subf %220, %236 : vector<8x32xf32>
    %cst_120 = arith.constant 9.99999974E-6 : f32
    %238 = vector.broadcast %cst_120 : f32 to vector<8x1xf32>
    %239 = arith.addf %235, %238 : vector<8x1xf32>
    %240 = math.rsqrt %239 : vector<8x1xf32>
    %241 = vector.broadcast %240 : vector<8x1xf32> to vector<8x32xf32>
    %242 = arith.mulf %237, %241 : vector<8x32xf32>
    %243 = vector.broadcast %222 : vector<1x32xf32> to vector<8x32xf32>
    %244 = arith.mulf %242, %243 : vector<8x32xf32>
    %245 = vector.broadcast %224 : vector<1x32xf32> to vector<8x32xf32>
    %246 = arith.addf %244, %245 : vector<8x32xf32>
    %247 = arith.truncf %246 : vector<8x32xf32> to vector<8x32xbf16>
    %248 = vector.shape_cast %247 : vector<8x32xbf16> to vector<1x8x32xbf16>
    %249 = vector.broadcast %248 : vector<1x8x32xbf16> to vector<2x8x32xbf16>
    %c1_121 = arith.constant 1 : index
    %c0_122 = arith.constant 0 : index
    %c0_123 = arith.constant 0 : index
    %c0_124 = arith.constant 0 : index
    %250 = vector.load %arg11[%c1_121, %c0_122, %c0_123, %c0_124] : memref<2x2x32x16xbf16, #tpu.memory_space<vmem>>, vector<1x2x32x16xbf16>
    %251 = vector.shape_cast %250 : vector<1x2x32x16xbf16> to vector<2x32x16xbf16>
    "tpu.trace_start"() <{level = 10 : i32, message = "hnk,hkd->hnd"}> : () -> ()
    %cst_125 = arith.constant dense<0.000000e+00> : vector<2x8x16xf32>
    %252 = tpu.matmul %249, %251, %cst_125 {dimension_numbers = #tpu.dot_dimension_numbers<[2], [1], [1], [2], [0, 0, 0, 1, 1, 2], [0], [0]>} : vector<2x8x32xbf16>, vector<2x32x16xbf16>, vector<2x8x16xf32> -> vector<2x8x16xf32>
    "tpu.trace_stop"() : () -> ()
    %c1_126 = arith.constant 1 : index
    %c0_127 = arith.constant 0 : index
    %c0_128 = arith.constant 0 : index
    %c0_129 = arith.constant 0 : index
    %253 = vector.load %arg12[%c1_126, %c0_127, %c0_128, %c0_129] : memref<2x2x32x16xbf16, #tpu.memory_space<vmem>>, vector<1x2x32x16xbf16>
    %254 = vector.shape_cast %253 : vector<1x2x32x16xbf16> to vector<2x32x16xbf16>
    "tpu.trace_start"() <{level = 10 : i32, message = "hnk,hkd->hnd"}> : () -> ()
    %cst_130 = arith.constant dense<0.000000e+00> : vector<2x8x16xf32>
    %255 = tpu.matmul %249, %254, %cst_130 {dimension_numbers = #tpu.dot_dimension_numbers<[2], [1], [1], [2], [0, 0, 0, 1, 1, 2], [0], [0]>} : vector<2x8x32xbf16>, vector<2x32x16xbf16>, vector<2x8x16xf32> -> vector<2x8x16xf32>
    "tpu.trace_stop"() : () -> ()
    %c1_131 = arith.constant 1 : index
    %c0_132 = arith.constant 0 : index
    %c0_133 = arith.constant 0 : index
    %c0_134 = arith.constant 0 : index
    %256 = vector.load %arg13[%c1_131, %c0_132, %c0_133, %c0_134] : memref<2x2x32x16xbf16, #tpu.memory_space<vmem>>, vector<1x2x32x16xbf16>
    %257 = vector.shape_cast %256 : vector<1x2x32x16xbf16> to vector<2x32x16xbf16>
    "tpu.trace_start"() <{level = 10 : i32, message = "hnk,hkd->hnd"}> : () -> ()
    %cst_135 = arith.constant dense<0.000000e+00> : vector<2x8x16xf32>
    %258 = tpu.matmul %249, %257, %cst_135 {dimension_numbers = #tpu.dot_dimension_numbers<[2], [1], [1], [2], [0, 0, 0, 1, 1, 2], [0], [0]>} : vector<2x8x32xbf16>, vector<2x32x16xbf16>, vector<2x8x16xf32> -> vector<2x8x16xf32>
    "tpu.trace_stop"() : () -> ()
    %259 = arith.truncf %252 : vector<2x8x16xf32> to vector<2x8x16xbf16>
    %260 = arith.truncf %255 : vector<2x8x16xf32> to vector<2x8x16xbf16>
    "tpu.trace_start"() <{level = 10 : i32, message = "hnd,hmd->hnm"}> : () -> ()
    %cst_136 = arith.constant dense<0.000000e+00> : vector<2x8x8xf32>
    %261 = tpu.matmul %259, %260, %cst_136 {dimension_numbers = #tpu.dot_dimension_numbers<[2], [2], [1], [1], [0, 0, 0, 1, 1, 1], [0], [0]>} : vector<2x8x16xbf16>, vector<2x8x16xbf16>, vector<2x8x8xf32> -> vector<2x8x8xf32>
    "tpu.trace_stop"() : () -> ()
    %cst_137 = arith.constant 2.500000e-01 : f32
    %262 = vector.broadcast %cst_137 : f32 to vector<2x8x8xf32>
    %263 = arith.mulf %261, %262 : vector<2x8x8xf32>
    %cst_138 = arith.constant dense<0xFF800000> : vector<2x8xf32>
    %264 = vector.multi_reduction <maximumf>, %263, %cst_138 [2] : vector<2x8x8xf32> to vector<2x8xf32>
    %265 = vector.shape_cast %264 : vector<2x8xf32> to vector<2x8x1xf32>
    %266 = vector.broadcast %265 : vector<2x8x1xf32> to vector<2x8x8xf32>
    %267 = arith.subf %263, %266 : vector<2x8x8xf32>
    %268 = math.exp %267 : vector<2x8x8xf32>
    %cst_139 = arith.constant dense<0.000000e+00> : vector<2x8xf32>
    %269 = vector.multi_reduction <add>, %268, %cst_139 [2] : vector<2x8x8xf32> to vector<2x8xf32>
    %270 = vector.shape_cast %269 : vector<2x8xf32> to vector<2x8x1xf32>
    %271 = tpu.reciprocal %270 {approx = true} : vector<2x8x1xf32> -> vector<2x8x1xf32>
    %272 = vector.broadcast %271 : vector<2x8x1xf32> to vector<2x8x8xf32>
    %273 = arith.mulf %268, %272 : vector<2x8x8xf32>
    %274 = arith.truncf %273 : vector<2x8x8xf32> to vector<2x8x8xbf16>
    %275 = arith.truncf %258 : vector<2x8x16xf32> to vector<2x8x16xbf16>
    "tpu.trace_start"() <{level = 10 : i32, message = "hnm,hmd->hnd"}> : () -> ()
    %cst_140 = arith.constant dense<0.000000e+00> : vector<2x8x16xf32>
    %276 = tpu.matmul %274, %275, %cst_140 {dimension_numbers = #tpu.dot_dimension_numbers<[2], [1], [1], [2], [0, 0, 0, 1, 1, 2], [0], [0]>} : vector<2x8x8xbf16>, vector<2x8x16xbf16>, vector<2x8x16xf32> -> vector<2x8x16xf32>
    "tpu.trace_stop"() : () -> ()
    %277 = arith.truncf %276 : vector<2x8x16xf32> to vector<2x8x16xbf16>
    %c1_141 = arith.constant 1 : index
    %c0_142 = arith.constant 0 : index
    %c0_143 = arith.constant 0 : index
    %c0_144 = arith.constant 0 : index
    %278 = vector.load %arg14[%c1_141, %c0_142, %c0_143, %c0_144] : memref<2x2x16x32xbf16, #tpu.memory_space<vmem>>, vector<1x2x16x32xbf16>
    %279 = vector.shape_cast %278 : vector<1x2x16x32xbf16> to vector<2x16x32xbf16>
    "tpu.trace_start"() <{level = 10 : i32, message = "hnd,hdk->hnk"}> : () -> ()
    %cst_145 = arith.constant dense<0.000000e+00> : vector<2x8x32xf32>
    %280 = tpu.matmul %277, %279, %cst_145 {dimension_numbers = #tpu.dot_dimension_numbers<[2], [1], [1], [2], [0, 0, 0, 1, 1, 2], [0], [0]>} : vector<2x8x16xbf16>, vector<2x16x32xbf16>, vector<2x8x32xf32> -> vector<2x8x32xf32>
    "tpu.trace_stop"() : () -> ()
    %cst_146 = arith.constant dense<0.000000e+00> : vector<8x32xf32>
    %281 = vector.multi_reduction <add>, %280, %cst_146 [0] : vector<2x8x32xf32> to vector<8x32xf32>
    %282 = arith.addf %220, %281 : vector<8x32xf32>
    %c1_147 = arith.constant 1 : index
    %c0_148 = arith.constant 0 : index
    %c0_149 = arith.constant 0 : index
    %283 = vector.load %arg15[%c1_147, %c0_148, %c0_149] : memref<2x1x32xf32, #tpu.memory_space<vmem>>, vector<1x1x32xf32>
    %284 = vector.shape_cast %283 : vector<1x1x32xf32> to vector<1x32xf32>
    %285 = vector.broadcast %284 : vector<1x32xf32> to vector<8x32xf32>
    %286 = arith.addf %282, %285 : vector<8x32xf32>
    %c1_150 = arith.constant 1 : index
    %c0_151 = arith.constant 0 : index
    %c0_152 = arith.constant 0 : index
    %287 = vector.load %arg16[%c1_150, %c0_151, %c0_152] : memref<2x1x32xf32, #tpu.memory_space<vmem>>, vector<1x1x32xf32>
    %288 = vector.shape_cast %287 : vector<1x1x32xf32> to vector<1x32xf32>
    %c1_153 = arith.constant 1 : index
    %c0_154 = arith.constant 0 : index
    %c0_155 = arith.constant 0 : index
    %289 = vector.load %arg17[%c1_153, %c0_154, %c0_155] : memref<2x1x32xf32, #tpu.memory_space<vmem>>, vector<1x1x32xf32>
    %290 = vector.shape_cast %289 : vector<1x1x32xf32> to vector<1x32xf32>
    %cst_156 = arith.constant dense<0.000000e+00> : vector<8xf32>
    %291 = vector.multi_reduction <add>, %286, %cst_156 [1] : vector<8x32xf32> to vector<8xf32>
    %292 = vector.shape_cast %291 : vector<8xf32> to vector<8x1xf32>
    %cst_157 = arith.constant 3.200000e+01 : f32
    %293 = vector.broadcast %cst_157 : f32 to vector<8x1xf32>
    %294 = arith.divf %292, %293 : vector<8x1xf32>
    %295 = vector.broadcast %294 : vector<8x1xf32> to vector<8x32xf32>
    %296 = arith.subf %286, %295 : vector<8x32xf32>
    %297 = arith.mulf %296, %296 : vector<8x32xf32>
    %cst_158 = arith.constant dense<0.000000e+00> : vector<8xf32>
    %298 = vector.multi_reduction <add>, %297, %cst_158 [1] : vector<8x32xf32> to vector<8xf32>
    %299 = vector.shape_cast %298 : vector<8xf32> to vector<8x1xf32>
    %cst_159 = arith.constant 3.200000e+01 : f32
    %300 = vector.broadcast %cst_159 : f32 to vector<8x1xf32>
    %301 = arith.divf %299, %300 : vector<8x1xf32>
    %302 = vector.broadcast %294 : vector<8x1xf32> to vector<8x32xf32>
    %303 = arith.subf %286, %302 : vector<8x32xf32>
    %cst_160 = arith.constant 9.99999974E-6 : f32
    %304 = vector.broadcast %cst_160 : f32 to vector<8x1xf32>
    %305 = arith.addf %301, %304 : vector<8x1xf32>
    %306 = math.rsqrt %305 : vector<8x1xf32>
    %307 = vector.broadcast %306 : vector<8x1xf32> to vector<8x32xf32>
    %308 = arith.mulf %303, %307 : vector<8x32xf32>
    %309 = vector.broadcast %288 : vector<1x32xf32> to vector<8x32xf32>
    %310 = arith.mulf %308, %309 : vector<8x32xf32>
    %311 = vector.broadcast %290 : vector<1x32xf32> to vector<8x32xf32>
    %312 = arith.addf %310, %311 : vector<8x32xf32>
    %313 = arith.truncf %312 : vector<8x32xf32> to vector<8x32xbf16>
    %c1_161 = arith.constant 1 : index
    %c0_162 = arith.constant 0 : index
    %c0_163 = arith.constant 0 : index
    %314 = vector.load %arg18[%c1_161, %c0_162, %c0_163] : memref<2x32x64xbf16, #tpu.memory_space<vmem>>, vector<1x32x64xbf16>
    %315 = vector.shape_cast %314 : vector<1x32x64xbf16> to vector<32x64xbf16>
    %cst_164 = arith.constant dense<0.000000e+00> : vector<8x64xf32>
    %316 = tpu.matmul %313, %315, %cst_164 {dimension_numbers = #tpu.dot_dimension_numbers<[1], [0], [0], [1], [0, 0, 1, 1], [], []>} : vector<8x32xbf16>, vector<32x64xbf16>, vector<8x64xf32> -> vector<8x64xf32>
    %c1_165 = arith.constant 1 : index
    %c0_166 = arith.constant 0 : index
    %c0_167 = arith.constant 0 : index
    %317 = vector.load %arg19[%c1_165, %c0_166, %c0_167] : memref<2x1x64xf32, #tpu.memory_space<vmem>>, vector<1x1x64xf32>
    %318 = vector.shape_cast %317 : vector<1x1x64xf32> to vector<1x64xf32>
    %319 = vector.broadcast %318 : vector<1x64xf32> to vector<8x64xf32>
    %320 = arith.addf %316, %319 : vector<8x64xf32>
    %cst_168 = arith.constant 5.000000e-01 : f32
    %321 = vector.broadcast %cst_168 : f32 to vector<8x64xf32>
    %322 = arith.mulf %321, %320 : vector<8x64xf32>
    %cst_169 = arith.constant 4.471500e-02 : f32
    %323 = vector.broadcast %cst_169 : f32 to vector<8x64xf32>
    %324 = arith.mulf %323, %320 : vector<8x64xf32>
    %325 = arith.mulf %324, %320 : vector<8x64xf32>
    %326 = arith.mulf %325, %320 : vector<8x64xf32>
    %327 = arith.addf %320, %326 : vector<8x64xf32>
    %cst_170 = arith.constant 0.797884583 : f32
    %328 = vector.broadcast %cst_170 : f32 to vector<8x64xf32>
    %329 = arith.mulf %328, %327 : vector<8x64xf32>
    %330 = math.tanh %329 : vector<8x64xf32>
    %cst_171 = arith.constant 1.000000e+00 : f32
    %331 = vector.broadcast %cst_171 : f32 to vector<8x64xf32>
    %332 = arith.addf %331, %330 : vector<8x64xf32>
    %333 = arith.mulf %322, %332 : vector<8x64xf32>
    %334 = arith.truncf %333 : vector<8x64xf32> to vector<8x64xbf16>
    %c1_172 = arith.constant 1 : index
    %c0_173 = arith.constant 0 : index
    %c0_174 = arith.constant 0 : index
    %335 = vector.load %arg20[%c1_172, %c0_173, %c0_174] : memref<2x64x32xbf16, #tpu.memory_space<vmem>>, vector<1x64x32xbf16>
    %336 = vector.shape_cast %335 : vector<1x64x32xbf16> to vector<64x32xbf16>
    %cst_175 = arith.constant dense<0.000000e+00> : vector<8x32xf32>
    %337 = tpu.matmul %334, %336, %cst_175 {dimension_numbers = #tpu.dot_dimension_numbers<[1], [0], [0], [1], [0, 0, 1, 1], [], []>} : vector<8x64xbf16>, vector<64x32xbf16>, vector<8x32xf32> -> vector<8x32xf32>
    %338 = arith.addf %286, %337 : vector<8x32xf32>
    %c1_176 = arith.constant 1 : index
    %c0_177 = arith.constant 0 : index
    %c0_178 = arith.constant 0 : index
    %339 = vector.load %arg21[%c1_176, %c0_177, %c0_178] : memref<2x1x32xf32, #tpu.memory_space<vmem>>, vector<1x1x32xf32>
    %340 = vector.shape_cast %339 : vector<1x1x32xf32> to vector<1x32xf32>
    %341 = vector.broadcast %340 : vector<1x32xf32> to vector<8x32xf32>
    %342 = arith.addf %338, %341 : vector<8x32xf32>
    %c0_179 = arith.constant 0 : index
    %c0_180 = arith.constant 0 : index
    %343 = vector.load %arg25[%c0_179, %c0_180] : memref<1x32xf32, #tpu.memory_space<vmem>>, vector<1x32xf32>
    %c0_181 = arith.constant 0 : index
    %c0_182 = arith.constant 0 : index
    %344 = vector.load %arg26[%c0_181, %c0_182] : memref<1x32xf32, #tpu.memory_space<vmem>>, vector<1x32xf32>
    %cst_183 = arith.constant dense<0.000000e+00> : vector<8xf32>
    %345 = vector.multi_reduction <add>, %342, %cst_183 [1] : vector<8x32xf32> to vector<8xf32>
    %346 = vector.shape_cast %345 : vector<8xf32> to vector<8x1xf32>
    %cst_184 = arith.constant 3.200000e+01 : f32
    %347 = vector.broadcast %cst_184 : f32 to vector<8x1xf32>
    %348 = arith.divf %346, %347 : vector<8x1xf32>
    %349 = vector.broadcast %348 : vector<8x1xf32> to vector<8x32xf32>
    %350 = arith.subf %342, %349 : vector<8x32xf32>
    %351 = arith.mulf %350, %350 : vector<8x32xf32>
    %cst_185 = arith.constant dense<0.000000e+00> : vector<8xf32>
    %352 = vector.multi_reduction <add>, %351, %cst_185 [1] : vector<8x32xf32> to vector<8xf32>
    %353 = vector.shape_cast %352 : vector<8xf32> to vector<8x1xf32>
    %cst_186 = arith.constant 3.200000e+01 : f32
    %354 = vector.broadcast %cst_186 : f32 to vector<8x1xf32>
    %355 = arith.divf %353, %354 : vector<8x1xf32>
    %356 = vector.broadcast %348 : vector<8x1xf32> to vector<8x32xf32>
    %357 = arith.subf %342, %356 : vector<8x32xf32>
    %cst_187 = arith.constant 9.99999974E-6 : f32
    %358 = vector.broadcast %cst_187 : f32 to vector<8x1xf32>
    %359 = arith.addf %355, %358 : vector<8x1xf32>
    %360 = math.rsqrt %359 : vector<8x1xf32>
    %361 = vector.broadcast %360 : vector<8x1xf32> to vector<8x32xf32>
    %362 = arith.mulf %357, %361 : vector<8x32xf32>
    %363 = vector.broadcast %343 : vector<1x32xf32> to vector<8x32xf32>
    %364 = arith.mulf %362, %363 : vector<8x32xf32>
    %365 = vector.broadcast %344 : vector<1x32xf32> to vector<8x32xf32>
    %366 = arith.addf %364, %365 : vector<8x32xf32>
    %cst_188 = arith.constant dense<0.000000e+00> : vector<32xf32>
    %367 = vector.multi_reduction <add>, %366, %cst_188 [0] : vector<8x32xf32> to vector<32xf32>
    %368 = vector.shape_cast %367 : vector<32xf32> to vector<1x32xf32>
    %cst_189 = arith.constant 8.000000e+00 : f32
    %369 = vector.broadcast %cst_189 : f32 to vector<1x32xf32>
    %370 = arith.divf %368, %369 : vector<1x32xf32>
    %371 = arith.truncf %370 : vector<1x32xf32> to vector<1x32xbf16>
    %c0_190 = arith.constant 0 : index
    %c0_191 = arith.constant 0 : index
    %372 = vector.load %arg27[%c0_190, %c0_191] : memref<32x10xbf16, #tpu.memory_space<vmem>>, vector<32x10xbf16>
    %cst_192 = arith.constant dense<0.000000e+00> : vector<1x10xf32>
    %373 = tpu.matmul %371, %372, %cst_192 {dimension_numbers = #tpu.dot_dimension_numbers<[1], [0], [0], [1], [0, 0, 1, 1], [], []>} : vector<1x32xbf16>, vector<32x10xbf16>, vector<1x10xf32> -> vector<1x10xf32>
    %c0_193 = arith.constant 0 : index
    %c0_194 = arith.constant 0 : index
    %374 = vector.load %arg28[%c0_193, %c0_194] : memref<1x10xf32, #tpu.memory_space<vmem>>, vector<1x10xf32>
    %375 = arith.addf %373, %374 : vector<1x10xf32>
    %c0_195 = arith.constant 0 : index
    %c0_196 = arith.constant 0 : index
    %c0_197 = arith.constant 0 : index
    %376 = vector.load %arg29[%c0_195, %c0_196, %c0_197] : memref<1x1x10xf32, #tpu.memory_space<vmem>>, vector<1x1x10xf32>
    %377 = vector.shape_cast %376 : vector<1x1x10xf32> to vector<1x10xf32>
    %378 = vector.shape_cast %375 : vector<1x10xf32> to vector<1x1x10xf32>
    tpu.vector_store %arg29[%c0_195, %c0_196, %c0_197], %378 {strides = array<i32>} : memref<1x1x10xf32, #tpu.memory_space<vmem>>, vector<1x1x10xf32>,
    return
  }
  func.func @transform_0(%arg0: i32) -> (i32, i32, i32) {
    %c0_i32 = arith.constant 0 : i32
    %c0_i32_0 = arith.constant 0 : i32
    %c0_i32_1 = arith.constant 0 : i32
    return %arg0, %c0_i32, %c0_i32_0 : i32, i32, i32
  }
  func.func @transform_1(%arg0: i32) -> (i32, i32) {
    %c0_i32 = arith.constant 0 : i32
    %c0_i32_0 = arith.constant 0 : i32
    %c0_i32_1 = arith.constant 0 : i32
    return %c0_i32, %c0_i32_0 : i32, i32
  }
  func.func @transform_2(%arg0: i32) -> (i32, i32) {
    %c0_i32 = arith.constant 0 : i32
    %c0_i32_0 = arith.constant 0 : i32
    %c0_i32_1 = arith.constant 0 : i32
    return %c0_i32, %c0_i32_0 : i32, i32
  }
  func.func @transform_3(%arg0: i32) -> (i32, i32) {
    %c0_i32 = arith.constant 0 : i32
    %c0_i32_0 = arith.constant 0 : i32
    %c0_i32_1 = arith.constant 0 : i32
    return %c0_i32, %c0_i32_0 : i32, i32
  }
  func.func @transform_4(%arg0: i32) -> (i32, i32) {
    %c0_i32 = arith.constant 0 : i32
    %c0_i32_0 = arith.constant 0 : i32
    %c0_i32_1 = arith.constant 0 : i32
    return %c0_i32, %c0_i32_0 : i32, i32
  }
  func.func @transform_5(%arg0: i32) -> (i32, i32) {
    %c0_i32 = arith.constant 0 : i32
    %c0_i32_0 = arith.constant 0 : i32
    %c0_i32_1 = arith.constant 0 : i32
    return %c0_i32, %c0_i32_0 : i32, i32
  }
  func.func @transform_6(%arg0: i32) -> (i32, i32) {
    %c0_i32 = arith.constant 0 : i32
    %c0_i32_0 = arith.constant 0 : i32
    %c0_i32_1 = arith.constant 0 : i32
    return %c0_i32, %c0_i32_0 : i32, i32
  }
  func.func @transform_7(%arg0: i32) -> (i32, i32) {
    %c0_i32 = arith.constant 0 : i32
    %c0_i32_0 = arith.constant 0 : i32
    %c0_i32_1 = arith.constant 0 : i32
    return %c0_i32, %c0_i32_0 : i32, i32
  }
  func.func @transform_8(%arg0: i32) -> (i32, i32, i32) {
    %c0_i32 = arith.constant 0 : i32
    %c0_i32_0 = arith.constant 0 : i32
    %c0_i32_1 = arith.constant 0 : i32
    %c0_i32_2 = arith.constant 0 : i32
    return %c0_i32, %c0_i32_0, %c0_i32_1 : i32, i32, i32
  }
  func.func @transform_9(%arg0: i32) -> (i32, i32, i32) {
    %c0_i32 = arith.constant 0 : i32
    %c0_i32_0 = arith.constant 0 : i32
    %c0_i32_1 = arith.constant 0 : i32
    %c0_i32_2 = arith.constant 0 : i32
    return %c0_i32, %c0_i32_0, %c0_i32_1 : i32, i32, i32
  }
  func.func @transform_10(%arg0: i32) -> (i32, i32, i32, i32) {
    %c0_i32 = arith.constant 0 : i32
    %c0_i32_0 = arith.constant 0 : i32
    %c0_i32_1 = arith.constant 0 : i32
    %c0_i32_2 = arith.constant 0 : i32
    %c0_i32_3 = arith.constant 0 : i32
    return %c0_i32, %c0_i32_0, %c0_i32_1, %c0_i32_2 : i32, i32, i32, i32
  }
  func.func @transform_11(%arg0: i32) -> (i32, i32, i32, i32) {
    %c0_i32 = arith.constant 0 : i32
    %c0_i32_0 = arith.constant 0 : i32
    %c0_i32_1 = arith.constant 0 : i32
    %c0_i32_2 = arith.constant 0 : i32
    %c0_i32_3 = arith.constant 0 : i32
    return %c0_i32, %c0_i32_0, %c0_i32_1, %c0_i32_2 : i32, i32, i32, i32
  }
  func.func @transform_12(%arg0: i32) -> (i32, i32, i32, i32) {
    %c0_i32 = arith.constant 0 : i32
    %c0_i32_0 = arith.constant 0 : i32
    %c0_i32_1 = arith.constant 0 : i32
    %c0_i32_2 = arith.constant 0 : i32
    %c0_i32_3 = arith.constant 0 : i32
    return %c0_i32, %c0_i32_0, %c0_i32_1, %c0_i32_2 : i32, i32, i32, i32
  }
  func.func @transform_13(%arg0: i32) -> (i32, i32, i32, i32) {
    %c0_i32 = arith.constant 0 : i32
    %c0_i32_0 = arith.constant 0 : i32
    %c0_i32_1 = arith.constant 0 : i32
    %c0_i32_2 = arith.constant 0 : i32
    %c0_i32_3 = arith.constant 0 : i32
    return %c0_i32, %c0_i32_0, %c0_i32_1, %c0_i32_2 : i32, i32, i32, i32
  }
  func.func @transform_14(%arg0: i32) -> (i32, i32, i32) {
    %c0_i32 = arith.constant 0 : i32
    %c0_i32_0 = arith.constant 0 : i32
    %c0_i32_1 = arith.constant 0 : i32
    %c0_i32_2 = arith.constant 0 : i32
    return %c0_i32, %c0_i32_0, %c0_i32_1 : i32, i32, i32
  }
  func.func @transform_15(%arg0: i32) -> (i32, i32, i32) {
    %c0_i32 = arith.constant 0 : i32
    %c0_i32_0 = arith.constant 0 : i32
    %c0_i32_1 = arith.constant 0 : i32
    %c0_i32_2 = arith.constant 0 : i32
    return %c0_i32, %c0_i32_0, %c0_i32_1 : i32, i32, i32
  }
  func.func @transform_16(%arg0: i32) -> (i32, i32, i32) {
    %c0_i32 = arith.constant 0 : i32
    %c0_i32_0 = arith.constant 0 : i32
    %c0_i32_1 = arith.constant 0 : i32
    %c0_i32_2 = arith.constant 0 : i32
    return %c0_i32, %c0_i32_0, %c0_i32_1 : i32, i32, i32
  }
  func.func @transform_17(%arg0: i32) -> (i32, i32, i32) {
    %c0_i32 = arith.constant 0 : i32
    %c0_i32_0 = arith.constant 0 : i32
    %c0_i32_1 = arith.constant 0 : i32
    %c0_i32_2 = arith.constant 0 : i32
    return %c0_i32, %c0_i32_0, %c0_i32_1 : i32, i32, i32
  }
  func.func @transform_18(%arg0: i32) -> (i32, i32, i32) {
    %c0_i32 = arith.constant 0 : i32
    %c0_i32_0 = arith.constant 0 : i32
    %c0_i32_1 = arith.constant 0 : i32
    %c0_i32_2 = arith.constant 0 : i32
    return %c0_i32, %c0_i32_0, %c0_i32_1 : i32, i32, i32
  }
  func.func @transform_19(%arg0: i32) -> (i32, i32, i32) {
    %c0_i32 = arith.constant 0 : i32
    %c0_i32_0 = arith.constant 0 : i32
    %c0_i32_1 = arith.constant 0 : i32
    %c0_i32_2 = arith.constant 0 : i32
    return %c0_i32, %c0_i32_0, %c0_i32_1 : i32, i32, i32
  }
  func.func @transform_20(%arg0: i32) -> (i32, i32, i32) {
    %c0_i32 = arith.constant 0 : i32
    %c0_i32_0 = arith.constant 0 : i32
    %c0_i32_1 = arith.constant 0 : i32
    %c0_i32_2 = arith.constant 0 : i32
    return %c0_i32, %c0_i32_0, %c0_i32_1 : i32, i32, i32
  }
  func.func @transform_21(%arg0: i32) -> (i32, i32) {
    %c0_i32 = arith.constant 0 : i32
    %c0_i32_0 = arith.constant 0 : i32
    %c0_i32_1 = arith.constant 0 : i32
    return %c0_i32, %c0_i32_0 : i32, i32
  }
  func.func @transform_22(%arg0: i32) -> (i32, i32) {
    %c0_i32 = arith.constant 0 : i32
    %c0_i32_0 = arith.constant 0 : i32
    %c0_i32_1 = arith.constant 0 : i32
    return %c0_i32, %c0_i32_0 : i32, i32
  }
  func.func @transform_23(%arg0: i32) -> (i32, i32) {
    %c0_i32 = arith.constant 0 : i32
    %c0_i32_0 = arith.constant 0 : i32
    %c0_i32_1 = arith.constant 0 : i32
    return %c0_i32, %c0_i32_0 : i32, i32
  }
  func.func @transform_24(%arg0: i32) -> (i32, i32) {
    %c0_i32 = arith.constant 0 : i32
    %c0_i32_0 = arith.constant 0 : i32
    %c0_i32_1 = arith.constant 0 : i32
    return %c0_i32, %c0_i32_0 : i32, i32
  }
  func.func @transform_25(%arg0: i32) -> (i32, i32) {
    %c0_i32 = arith.constant 0 : i32
    %c0_i32_0 = arith.constant 0 : i32
    %c0_i32_1 = arith.constant 0 : i32
    return %c0_i32, %c0_i32_0 : i32, i32
  }
  func.func @transform_26(%arg0: i32) -> (i32, i32) {
    %c0_i32 = arith.constant 0 : i32
    %c0_i32_0 = arith.constant 0 : i32
    %c0_i32_1 = arith.constant 0 : i32
    return %c0_i32, %c0_i32_0 : i32, i32
  }
  func.func @transform_27(%arg0: i32) -> (i32, i32) {
    %c0_i32 = arith.constant 0 : i32
    %c0_i32_0 = arith.constant 0 : i32
    %c0_i32_1 = arith.constant 0 : i32
    return %c0_i32, %c0_i32_0 : i32, i32
  }
  func.func @transform_28(%arg0: i32) -> (i32, i32, i32) {
    %c0_i32 = arith.constant 0 : i32
    %c0_i32_0 = arith.constant 0 : i32
    %c0_i32_1 = arith.constant 0 : i32
    return %arg0, %c0_i32, %c0_i32_0 : i32, i32, i32
  }
}

</mosaic_0001>

<bundles_post_ra>
// kernel: patch_merger_forward.1
= control target key start
LH: loop header
LB: loop body
LE: loop exit
PB: predicated region body
PF: predicated region fallthrough
CT: control target
= control target key end

     0   :  { %s4596_s0 = inlined_call_operand.vmem [shape: f32[2,16,48], index: 0, kind: input, shape index: {}]   ;;  %s4597_s1 = inlined_call_operand.vmem [shape: f32[16,32], index: 1, kind: input, shape index: {}]   ;;  %s4598_s2 = inlined_call_operand.vmem [shape: f32[1,48], index: 2, kind: input, shape index: {}]   ;;  %s4599_s3 = inlined_call_operand.vmem [shape: f32[1,48], index: 3, kind: input, shape index: {}]   ;;  %s4600_s4 = inlined_call_operand.vmem [shape: bf16[48,32], index: 4, kind: input, shape index: {}]   ;;  %s4601_s5 = inlined_call_operand.vmem [shape: f32[1,32], index: 5, kind: input, shape index: {}]   ;;  %s4602_s6 = inlined_call_operand.vmem [shape: f32[1,32], index: 6, kind: input, shape index: {}]   ;;  %s4603_s7 = inlined_call_operand.vmem [shape: f32[1,32], index: 7, kind: input, shape index: {}]   ;;  %s4604_s8 = inlined_call_operand.vmem [shape: f32[2,1,32], index: 8, kind: input, shape index: {}]   ;;  %s4605_s9 = inlined_call_operand.vmem [shape: f32[2,1,32], index: 9, kind: input, shape index: {}]   ;;  %s4606_s10 = inlined_call_operand.vmem [shape: bf16[2,2,32,16], index: 10, kind: input, shape index: {}]   ;;  %s4607_s11 = inlined_call_operand.vmem [shape: bf16[2,2,32,16], index: 11, kind: input, shape index: {}]   ;;  %s4608_s12 = inlined_call_operand.vmem [shape: bf16[2,2,32,16], index: 12, kind: input, shape index: {}]   ;;  %s4609_s13 = inlined_call_operand.vmem [shape: bf16[2,2,16,32], index: 13, kind: input, shape index: {}]   ;;  %s4610_s14 = inlined_call_operand.vmem [shape: f32[2,1,32], index: 14, kind: input, shape index: {}]   ;;  %s4611_s15 = inlined_call_operand.vmem [shape: f32[2,1,32], index: 15, kind: input, shape index: {}]   ;;  %s4612_s16 = inlined_call_operand.vmem [shape: f32[2,1,32], index: 16, kind: input, shape index: {}]   ;;  %s4613_s17 = inlined_call_operand.vmem [shape: bf16[2,32,64], index: 17, kind: input, shape index: {}]   ;;  %s4614_s18 = inlined_call_operand.vmem [shape: f32[2,1,64], index: 18, kind: input, shape index: {}]   ;;  %s4615_s19 = inlined_call_operand.vmem [shape: bf16[2,64,32], index: 19, kind: input, shape index: {}]   ;;  %s4616_s20 = inlined_call_operand.vmem [shape: f32[2,1,32], index: 20, kind: input, shape index: {}]   ;;  %s4617_s21 = inlined_call_operand.vmem [shape: bf16[8,32], index: 21, kind: input, shape index: {}]   ;;  %s4618_s22 = inlined_call_operand.vmem [shape: f32[1,32], index: 22, kind: input, shape index: {}]   ;;  %s4619_s23 = inlined_call_operand.vmem [shape: f32[1,32], index: 23, kind: input, shape index: {}]   ;;  %s4620_s24 = inlined_call_operand.vmem [shape: f32[1,32], index: 24, kind: input, shape index: {}]   ;;  %s4621_s25 = inlined_call_operand.vmem [shape: f32[1,32], index: 25, kind: input, shape index: {}]   ;;  %s4622_s26 = inlined_call_operand.vmem [shape: bf16[32,10], index: 26, kind: input, shape index: {}]   ;;  %s4623_s27 = inlined_call_operand.vmem [shape: f32[1,10], index: 27, kind: input, shape index: {}]   ;;  %s4624_s28 = inlined_call_operand.hbm [shape: f32[2,1,10], index: 28, kind: output, shape index: {}]  }
   0x1   :  { %4646 = sst [smem:[#allocation12_spill]] %s4596_s0 }
   0x2   :  { %4647 = sst [smem:[#allocation13_spill]] %s4597_s1 }
   0x3   :  { %4648 = sst [smem:[#allocation14_spill]] %s4598_s2 }
   0x4   :  { %4649 = sst [smem:[#allocation15_spill]] %s4599_s3 }
   0x5   :  { %4650 = sst [smem:[#allocation16_spill]] %s4600_s4 }
   0x6   :  { %4651 = sst [smem:[#allocation17_spill]] %s4601_s5 }
   0x7   :  { %4652 = sst [smem:[#allocation18_spill]] %s4602_s6 }
   0x8   :  { %4653 = sst [smem:[#allocation19_spill]] %s4603_s7 }
   0x9   :  { %4654 = sst [smem:[#allocation20_spill]] %s4604_s8 }
   0xa   :  { %4655 = sst [smem:[#allocation21_spill]] %s4605_s9 }
   0xb   :  { %4656 = sst [smem:[#allocation22_spill]] %s4606_s10 }
   0xc   :  { %4657 = sst [smem:[#allocation23_spill]] %s4607_s11 }
   0xd   :  { %4658 = sst [smem:[#allocation24_spill]] %s4608_s12 }
   0xe   :  { %4659 = sst [smem:[#allocation25_spill]] %s4624_s28 }
   0xf   :  { %33 = vsyncpa [#allocation3], 0 }
  0x10   :  { %35 = vsyncpa [#allocation3 + $0x1], 0  ;;  %s4052_s8 = smov 0   ;;  %s4054_s5 = smov 0  }
  0x11   :  { %s4056_s9 = smov 0   ;;  %s4058_s30 = smov 0  }
  0x12 LB: > { %4660 = sst [smem:[#allocation5_spill]] %s3890_s8  ;;  %s4073_s3 = sadd.s32 4294967295, %s3902_s30   ;;  %s3902_s30 = sphi %s4058_s30, %s4689_s30   ;;  %s3898_s9 = sphi %s4056_s9, %s4691_s9   ;;  %s3894_s5 = sphi %s4054_s5, %s4693_s5   ;;  %s3890_s8 = sphi %s4052_s8, %s4692_s8  }
  0x13   : > { %4661 = sst [smem:[#allocation6_spill]] %s3898_s9  ;;  %s3212_s6 = sadd.s32 4294967294, %s3902_s30  }
  0x14   : > { %4662 = sst [smem:[#allocation7_spill]] %s3902_s30  ;;  %s4077_s10 = sadd.s32 1, %s3902_s30  }
  0x15   : > { %4663 = sst [smem:[#allocation8_spill]] %s4077_s10  ;;  %s641_s0 = sadd.s32 1, %s3898_s9 }
  0x16   : > { %s638_s11 = ssub.s32 %s3902_s30, %s4077_s10  ;;  %p651_p0 = scmp.ne.s32.totalorder %s3898_s9, %s3894_s5 }
  0x17   : > { %p639_p1 = scmp.eq.s32.totalorder %s638_s11, 0  ;;  %p652_p2 = scmp.eq.s32.totalorder %s4073_s3, 1 }
  0x18   : > { %p657_p3 = scmp.ne.s32.totalorder %s3894_s5, %s3890_s8  ;;  %p658_p4 = scmp.eq.s32.totalorder %s3212_s6, 1 }
  0x19   : > { %s4088_s29 = scalar_select %p639_p1, %s3898_s9, %s641_s0  }
  0x1a   : > { %p4090_p5 = por %p652_p2, %p651_p0  ;;  %p4094_p6 = por %p658_p4, %p657_p3 }
  0x1b   : > { %4664 = sst [smem:[#allocation9_spill]] %s4088_s29  ;;  %p3215_p7 = scmp.ge.s32.totalorder %s3902_s30, 1 }
  0x1c   : > { %s4665_s2 = scalar_select %p4090_p5, 1, 0 }
  0x1d   : > { %s4667_s7 = scalar_select %p4094_p6, 1, 0 }
  0x1e   : > { %4666 = sst [smem:[#allocation10_spill]] %s4665_s2  ;;  %p765_p8 = scmp.lt.s32.totalorder %s3902_s30, 3 }
  0x1f   : > { %4668 = sst [smem:[#allocation11_spill]] %s4667_s7 }
  0x20   : > { %p766_p9 = pnand %p3215_p7, %p765_p8 }
  0x21   : > { %p838_p10 = scmp.lt.s32.totalorder (!%p766_p9), %s4073_s3, 1  ;;  %vm848_vm0 = vcmask (!%p766_p9), 392192   ;;  %s4669_s0 = sld [smem:[#allocation12_spill]] (!%p766_p9)  ;;  %v3904_v15 = vmov (!%p766_p9), 0.0   ;;  %vm3905_vm1 = vmmov (!%p766_p9), 0   ;;  %vm970_vm2 = vcmask (!%p766_p9), 261120  }
  0x22   : > { %769 = sbr.rel (%p766_p9) target bundleno = 7100 (0x1bbc), region = 132  ;;  %s4670_s4 = sld [smem:[#allocation16_spill]] (!%p766_p9)  ;;  %3456 = vmatprep.subr.bf16.mxu0 (!%p766_p9), %v3904_v15  ;;  %3466 = vmatprep.subr.bf16.mxu1 (!%p766_p9), %v3904_v15  ;;  %vm1412_vm3 = vcmask (!%p766_p9), 130048   ;;  %vm1933_vm4 = vcmask (!%p766_p9), 523264   ;;  %vm2639_vm5 = vcmask (!%p766_p9), 1043456   ;;  %vm2609_vm6 = vcmask (!%p766_p9), 64512  }
  0x23   : > { %3462 = vmatprep.mubr.msk.bf16.mxu0 (!%p766_p9), %vm3905_vm1, %v3904_v15  ;;  %3470 = vmatprep.mubr.msk.bf16.mxu1 (!%p766_p9), %vm3905_vm1, %v3904_v15  ;;  %s4673_s29 = sld [smem:[#allocation17_spill]] (!%p766_p9)  ;;  %s4676_s10 = sld [smem:[#allocation13_spill]] (!%p766_p9)  ;;  %vm3142_vm7 = vcmask (!%p766_p9), 73728  }
  0x24   : > { %s4677_s9 = sld [smem:[#allocation22_spill]] (!%p766_p9)  ;;  %s4679_s6 = sld [smem:[#allocation23_spill]] (!%p766_p9) }
  0x25   : > { %s4683_s2 = sld [smem:[#allocation24_spill]] (!%p766_p9)  ;;  %s3906_s8 = smov (!%p766_p9), [#allocation2]  }
  0x28   : > { %v3735_v14 = vld [vmem:[%s4670_s4] sm:$0xff] (!%p766_p9)   ;;  %v3736_v16 = vld [vmem:[%s4670_s4 + $0x8] sm:$0xff] (!%p766_p9)   ;;  %v3737_v17 = vld [vmem:[%s4670_s4 + $0x10] sm:$0xff] (!%p766_p9)  }
  0x29   : > { %s839_s12 = scalar_select %p838_p10, %s4073_s3, 1  ;;  %3457 = vmatpush3.bf16.msra.mxu0 %v3735_v14  ;;  %v3220_v35 = vld [vmem:[%s4673_s29] ss:$0 sm:$0xff] }
  0x2a   : > { %3458 = vmatprep.subr.bf16.mxu0 %v3904_v15  ;;  %s4678_s4 = smov %s4677_s9 }
  0x2b   : > { %s3368_s1 = sshll.u32 %s839_s12, 4  ;;  %s4674_s12 = sld [smem:[#allocation18_spill]] }
  0x2c   : > { %s842_s11 = scalar_lea.vmem %s4669_s0, %s3368_s1  ;;  %s4671_s1 = sld [smem:[#allocation14_spill]] }
  0x2d   : > { %v844_v0 = vld [vmem:[%s842_s11] sm:$0xff]  ;;  %v845_v1 = vld [vmem:[%s842_s11 + $0x8] sm:$0xff]  ;;  %3459 = vmatpush3.bf16.msra.mxu0 %v3736_v16  ;;  %s4672_s11 = sld [smem:[#allocation15_spill]]  ;;  %s4675_s0 = sld [smem:[#allocation19_spill]] }
  0x2e   : > { %v849_v2 = vsel %vm848_vm0, %v844_v0, 0.0  ;;  %v852_v3 = vsel %vm848_vm0, %v845_v1, 0.0  ;;  %3460 = vmatprep.subr.bf16.mxu0 %v3904_v15 }
  0x2f   : > { %850 = vadd.xlane.f32.xlu0 %v849_v2 }
  0x31   : > { %3461 = vmatpush3.bf16.msra.mxu0 %v3737_v17  ;;  %v3225_v61 = vld [vmem:[%s4674_s12] ss:$0 sm:$0xff] }
  0x32   : > { %3482 = vmatprep.subr.bf16.mxu0 %v3904_v15  ;;  %v3218_v26 = vld [vmem:[%s4671_s1] ss:$0 sm:$0xff] }
  0x33   : > { %853 = vadd.xlane.f32.xlu0 %v852_v3  ;;  %v3219_v30 = vld [vmem:[%s4672_s11] ss:$0 sm:$0xff]  ;;  %s836_s11 = sand.u32 1, %s3894_s5  }
  0x34   : > { %v1014_v3 = vld [vmem:[%s4676_s10] sm:$0xff] }
  0xbc   : > { %v851_v4 = vpop.xlane.xlu0 %850 }
  0xbd   : > { %v856_v5 = vmul.f32 0.020833334, %v851_v4 }
  0xbf   : > { %v858_v6 = vsub.f32 %v844_v0, %v856_v5  ;;  %v3226_v0 = vld [vmem:[%s4675_s0] ss:$0 sm:$0xff]  ;;  %s4682_s0 = sld [smem:[#allocation21_spill]] }
  0xc0   : > { %v854_v7 = vpop.xlane.xlu0 %853 }
  0xc1   : > { %v857_v8 = vmul.f32 0.020833334, %v854_v7  ;;  %v860_v9 = vmul.f32 %v858_v6, %v858_v6 }
  0xc3   : > { %v859_v10 = vsub.f32 %v845_v1, %v857_v8  ;;  %v862_v11 = vsel %vm848_vm0, %v860_v9, 0.0 }
  0xc4   : > { %863 = vadd.xlane.f32.xlu1 %v862_v11 }
  0xc5   : > { %v861_v12 = vmul.f32 %v859_v10, %v859_v10 }
  0xc7   : > { %v865_v13 = vsel %vm848_vm0, %v861_v12, 0.0 }
  0xc8   : > { %866 = vadd.xlane.f32.xlu1 %v865_v13 }
 0x151   : > { %v864_v18 = vpop.xlane.xlu1 %863 }
 0x152   : > { %v868_v19 = vmul.f32 0.020833334, %v864_v18 }
 0x154   : > { %v870_v20 = vadd.f32 1e-05, %v868_v19 }
 0x155   : > { %v867_v21 = vpop.xlane.xlu1 %866 }
 0x156   : > { %3780 = vrsqrt.f32 %v870_v20  ;;  %v869_v22 = vmul.f32 0.020833334, %v867_v21 }
 0x158   : > { %v871_v23 = vadd.f32 1e-05, %v869_v22 }
 0x15a   : > { %3782 = vrsqrt.f32 %v871_v23  ;;  %v3738_v23 = vld [vmem:[%s4677_s9] sm:$0xff]   ;;  %s4680_s9 = sld [smem:[#allocation20_spill]] }
 0x15b   : > { %3467 = vmatpush3.bf16.msra.mxu1 %v3738_v23 }
 0x15c   : > { %3468 = vmatprep.subr.bf16.mxu1 %v3904_v15 }
 0x160   : > { %v3781_v24 = vpop.eup %3780  ;;  %s4681_s12 = smov %s4680_s9 }
 0x161   : > { %v874_v25 = vmul.f32 %v3781_v24, %v858_v6  ;;  %v1015_v6 = vld [vmem:[%s4676_s10 + $0x8] sm:$0xff]  ;;  %v3739_v24 = vld [vmem:[%s4679_s6] sm:$0xff]   ;;  %s837_s10 = scalar_lea.vmem [#allocation2], %s836_s11 }
 0x162   : > { %s3157_s28 = sshll.u32 %s837_s10, 4  ;;  %s4556_s28 = int_to_ptr.vmem [resolvable:$true] %s3157_s28 }
 0x163   : > { %v882_v29 = vmul.f32 %v3218_v26, %v874_v25  ;;  %v3740_v25 = vld [vmem:[%s4678_s4 + $0x8] sm:$0xff]   ;;  %s3840_s29 = scalar_lea.vmem %s4556_s28, 16 }
 0x164   : > { %v3783_v27 = vpop.eup %3782  ;;  %3469 = vmatpush3.bf16.msra.mxu1 %v3740_v25  ;;  %p3841_p11 = scmp.ne.s32.totalorder %s4556_s28, %s3840_s29 }
 0x165   : > { %v875_v28 = vmul.f32 %v3783_v27, %v859_v10  ;;  %v890_v32 = vadd.f32 %v3219_v30, %v882_v29  ;;  %3474 = vmatprep.subr.bf16.mxu1 %v3904_v15 }
 0x166   : > { %p3842_p12 = pnand %p3841_p11, %p4090_p5 }
 0x167   : > { %v883_v31 = vmul.f32 %v3218_v26, %v875_v28  ;;  %v3741_v26 = vld [vmem:[%s4679_s6 + $0x8] sm:$0xff]  }
 0x168   : > { %p3843_p13 = pneg %p3842_p12 }
 0x169   : > { %v891_v33 = vadd.f32 %v3219_v30, %v883_v31 }
 0x16b   : > { %v892_v34 = vpack.c.bf16 %v891_v33, %v890_v32 }
 0x16d   : > { %3463 = vmatmul.mubr.msk.bf16.vlgmr.msra.gmra.mrb[0].mxu0 %vm848_vm0, %v892_v34  ;;  %v3227_v34 = vld [vmem:[%s4680_s9] ss:$0 sm:$0xff]  ;;  %s3365_s9 = sshll.u32 %s4073_s3, 4  ;;  %s3145_s3 = scalar_lea.sflag [#allocation3], %s836_s11 }
 0x16e   : > { %3486 = vmatprep.mubr.msk.bf16.mxu0 %vm3905_vm1, %v3904_v15  ;;  %3483 = vmatpush3.bf16.msra.mxu0 %v3739_v24 }
 0x16f   : > { %3484 = vmatprep.subr.bf16.mxu0 %v3904_v15 }
 0x172   : > { %3485 = vmatpush3.bf16.msra.mxu0 %v3741_v26 }
 0x173   : > { %3498 = vmatprep.subr.bf16.mxu0 %v3904_v15 }
 0x240   : > { %v961_v36 = vpop.f32.mrb[0].mxu0 }
 0x241   : > { %v962_v37 = vadd.f32 %v3220_v35, %v961_v36  ;;  %v3464_v38 = vpop.f32.mrb[1].mxu0 }
 0x242   : > { %v964_v39 = vpop.f32.mrb[2].mxu0 }
 0x243   : > { %v965_v40 = vadd.f32 %v3220_v35, %v964_v39  ;;  %v3465_v41 = vpop.f32.mrb[3].mxu0  ;;  %v971_v42 = vsel %vm970_vm2, %v962_v37, 0.0  ;;  %v3228_v39 = vld [vmem:[%s4682_s0] ss:$0 sm:$0xff] }
 0x244   : > { %972 = vadd.xlane.f32.xlu0 %v971_v42 }
 0x245   : > { %v974_v43 = vsel %vm970_vm2, %v965_v40, 0.0 }
 0x246   : > { %975 = vadd.xlane.f32.xlu1 %v974_v43  ;;  %v3742_v43 = vld [vmem:[%s4678_s4 + $0x10] sm:$0xff]  }
 0x2d1   : > { %v973_v44 = vpop.xlane.xlu0 %972 }
 0x2d2   : > { %v978_v45 = vmul.f32 0.03125, %v973_v44  ;;  %v3743_v44 = vld [vmem:[%s4683_s2] sm:$0xff]  }
 0x2d3   : > { %v976_v46 = vpop.xlane.xlu1 %975 }
 0x2d4   : > { %v980_v47 = vsub.f32 %v962_v37, %v978_v45  ;;  %v979_v48 = vmul.f32 0.03125, %v976_v46  ;;  %v3744_v46 = vld [vmem:[%s4678_s4 + $0x18] sm:$0xff]  }
 0x2d6   : > { %v981_v49 = vsub.f32 %v965_v40, %v979_v48  ;;  %v982_v50 = vmul.f32 %v980_v47, %v980_v47  ;;  %v3746_v48 = vld [vmem:[%s4679_s6 + $0x10] sm:$0xff]  }
 0x2d8   : > { %v984_v51 = vsel %vm970_vm2, %v982_v50, 0.0  ;;  %v983_v52 = vmul.f32 %v981_v49, %v981_v49  ;;  %v3748_v50 = vld [vmem:[%s4683_s2 + $0x10] sm:$0xff]  }
 0x2d9   : > { %985 = vadd.xlane.f32.xlu0 %v984_v51  ;;  %v3749_v51 = vld [vmem:[%s4683_s2 + $0x18] sm:$0xff]  }
 0x2da   : > { %v987_v53 = vsel %vm970_vm2, %v983_v52, 0.0 }
 0x2db   : > { %988 = vadd.xlane.f32.xlu1 %v987_v53 }
 0x366   : > { %v986_v54 = vpop.xlane.xlu0 %985 }
 0x367   : > { %v990_v55 = vmul.f32 0.03125, %v986_v54 }
 0x368   : > { %v989_v56 = vpop.xlane.xlu1 %988 }
 0x369   : > { %v992_v57 = vadd.f32 1e-05, %v990_v55  ;;  %v991_v58 = vmul.f32 0.03125, %v989_v56 }
 0x36b   : > { %3784 = vrsqrt.f32 %v992_v57  ;;  %v993_v59 = vadd.f32 1e-05, %v991_v58 }
 0x36d   : > { %3786 = vrsqrt.f32 %v993_v59 }
 0x375   : > { %v3785_v60 = vpop.eup %3784 }
 0x376   : > { %v996_v62 = vmul.f32 %v3785_v60, %v980_v47  ;;  %v3745_v47 = vld [vmem:[%s4683_s2 + $0x8] sm:$0xff]  }
 0x377   : > { %v3787_v63 = vpop.eup %3786 }
 0x378   : > { %v1004_v1 = vmul.f32 %v3225_v61, %v996_v62  ;;  %v997_v2 = vmul.f32 %v3787_v63, %v981_v49  ;;  %v3747_v49 = vld [vmem:[%s4679_s6 + $0x18] sm:$0xff]  }
 0x37a   : > { %v1012_v4 = vadd.f32 %v3226_v0, %v1004_v1  ;;  %v1005_v5 = vmul.f32 %v3225_v61, %v997_v2 }
 0x37c   : > { %v4155_v7 = vadd.f32 %v1014_v3, %v1012_v4  ;;  %v1013_v8 = vadd.f32 %v3226_v0, %v1005_v5 }
 0x37e   : > { %v1020_v9 = vsel %vm970_vm2, %v4155_v7, 0.0  ;;  %v4159_v10 = vadd.f32 %v1015_v6, %v1013_v8 }
 0x37f   : > { %1021 = vadd.xlane.f32.xlu0 %v1020_v9 }
 0x380   : > { %v1023_v11 = vsel %vm970_vm2, %v4159_v10, 0.0 }
 0x381   : > { %1024 = vadd.xlane.f32.xlu1 %v1023_v11 }
 0x40c   : > { %v1022_v12 = vpop.xlane.xlu0 %1021 }
 0x40d   : > { %v1026_v13 = vmul.f32 0.03125, %v1022_v12 }
 0x40e   : > { %v1025_v14 = vpop.xlane.xlu1 %1024 }
 0x40f   : > { %v1028_v16 = vsub.f32 %v4155_v7, %v1026_v13  ;;  %v1027_v17 = vmul.f32 0.03125, %v1025_v14 }
 0x411   : > { %v1029_v18 = vsub.f32 %v4159_v10, %v1027_v17  ;;  %v1030_v19 = vmul.f32 %v1028_v16, %v1028_v16 }
 0x413   : > { %v1032_v20 = vsel %vm970_vm2, %v1030_v19, 0.0  ;;  %v1031_v21 = vmul.f32 %v1029_v18, %v1029_v18 }
 0x414   : > { %1033 = vadd.xlane.f32.xlu0 %v1032_v20 }
 0x415   : > { %v1035_v22 = vsel %vm970_vm2, %v1031_v21, 0.0 }
 0x416   : > { %1036 = vadd.xlane.f32.xlu1 %v1035_v22 }
 0x4a1   : > { %v1034_v27 = vpop.xlane.xlu0 %1033 }
 0x4a2   : > { %v1038_v28 = vmul.f32 0.03125, %v1034_v27 }
 0x4a3   : > { %v1037_v29 = vpop.xlane.xlu1 %1036 }
 0x4a4   : > { %v1040_v30 = vadd.f32 1e-05, %v1038_v28  ;;  %v1039_v31 = vmul.f32 0.03125, %v1037_v29 }
 0x4a6   : > { %3788 = vrsqrt.f32 %v1040_v30  ;;  %v1041_v32 = vadd.f32 1e-05, %v1039_v31 }
 0x4a8   : > { %3790 = vrsqrt.f32 %v1041_v32 }
 0x4b0   : > { %v3789_v33 = vpop.eup %3788 }
 0x4b1   : > { %v1044_v35 = vmul.f32 %v3789_v33, %v1028_v16 }
 0x4b2   : > { %v3791_v36 = vpop.eup %3790 }
 0x4b3   : > { %v1052_v37 = vmul.f32 %v3227_v34, %v1044_v35  ;;  %v1045_v38 = vmul.f32 %v3791_v36, %v1029_v18 }
 0x4b5   : > { %v1053_v40 = vmul.f32 %v3227_v34, %v1045_v38  ;;  %v1060_v41 = vadd.f32 %v3228_v39, %v1052_v37 }
 0x4b7   : > { %v1061_v42 = vadd.f32 %v3228_v39, %v1053_v40 }
 0x4b9   : > { %v1062_v45 = vpack.c.bf16 %v1061_v42, %v1060_v41 }
 0x4bb   : > { %3471 = vmatmul.mubr.msk.bf16.vlgmr.msra.gmra.mrb[0].mxu1 %vm970_vm2, %v1062_v45  ;;  %3487 = vmatmul.mubr.msk.bf16.vlgmr.msra.gmra.mrb[4].mxu0 %vm970_vm2, %v1062_v45 }
 0x4bc   : > { %3475 = vmatpush3.bf16.msra.mxu1 %v3742_v43  ;;  %3499 = vmatpush3.bf16.msra.mxu0 %v3743_v44 }
 0x4bd   : > { %3476 = vmatprep.subr.bf16.mxu1 %v3904_v15  ;;  %3500 = vmatprep.subr.bf16.mxu0 %v3904_v15 }
 0x4be   : > { %3478 = vmatprep.mubr.msk.bf16.mxu1 %vm3905_vm1, %v3904_v15  ;;  %3502 = vmatprep.mubr.msk.bf16.mxu0 %vm3905_vm1, %v3904_v15 }
 0x4c0   : > { %3477 = vmatpush3.bf16.msra.mxu1 %v3744_v46  ;;  %3501 = vmatpush3.bf16.msra.mxu0 %v3745_v47 }
 0x4c1   : > { %3490 = vmatprep.subr.bf16.mxu1 %v3904_v15  ;;  %3514 = vmatprep.subr.bf16.mxu0 %v3904_v15 }
 0x4c3   : > { %3479 = vmatmul.mubr.msk.bf16.vlgmr.msra.gmra.mrb[4].mxu1 %vm970_vm2, %v1062_v45  ;;  %3503 = vmatmul.mubr.msk.bf16.vlgmr.msra.gmra.mrb[8].mxu0 %vm970_vm2, %v1062_v45 }
 0x4c4   : > { %3491 = vmatpush3.bf16.msra.mxu1 %v3746_v48  ;;  %3494 = vmatprep.mubr.msk.bf16.mxu1 %vm3905_vm1, %v3904_v15 }
 0x4c5   : > { %3492 = vmatprep.subr.bf16.mxu1 %v3904_v15  ;;  %3516 = vmatprep.mubr.msk.bf16.mxu0 %vm3905_vm1, %v3904_v15 }
 0x4c8   : > { %3493 = vmatpush3.bf16.msra.mxu1 %v3747_v49 }
 0x4c9   : > { %3506 = vmatprep.subr.bf16.mxu1 %v3904_v15 }
 0x4cb   : > { %3495 = vmatmul.mubr.msk.bf16.vlgmr.msra.gmra.mrb[8].mxu1 %vm970_vm2, %v1062_v45 }
 0x4cc   : > { %3507 = vmatpush3.bf16.msra.mxu1 %v3748_v50  ;;  %3510 = vmatprep.mubr.msk.bf16.mxu1 %vm3905_vm1, %v3904_v15 }
 0x4cd   : > { %3508 = vmatprep.subr.bf16.mxu1 %v3904_v15 }
 0x4d0   : > { %3509 = vmatpush3.bf16.msra.mxu1 %v3749_v51 }
 0x4d1   : > { %3520 = vmatprep.subr.bf16.mxu1 %v3904_v15 }
 0x4d3   : > { %3511 = vmatmul.mubr.msk.bf16.vlgmr.msra.gmra.mrb[12].mxu1 %vm970_vm2, %v1062_v45 }
 0x4d4   : > { %3522 = vmatprep.mubr.msk.bf16.mxu1 %vm3905_vm1, %v3904_v15 }
 0x58e   : > { %v1120_v52 = vpop.f32.mrb[0].mxu1  ;;  %v1234_v53 = vpop.f32.mrb[4].mxu0 }
 0x58f   : > { %v3472_v54 = vpop.f32.mrb[1].mxu1  ;;  %v3488_v55 = vpop.f32.mrb[5].mxu0 }
 0x590   : > { %v1123_v56 = vpop.f32.mrb[2].mxu1  ;;  %v1237_v57 = vpop.f32.mrb[6].mxu0 }
 0x591   : > { %v1408_v58 = vpack.c.bf16 %v1123_v56, %v1120_v52  ;;  %v1410_v59 = vpack.c.bf16 %v1237_v57, %v1234_v53  ;;  %v3473_v60 = vpop.f32.mrb[3].mxu1  ;;  %v3489_v61 = vpop.f32.mrb[7].mxu0 }
 0x593   : > { %v1417_v62 = vsel %vm1412_vm3, %v1410_v59, 0 }
 0x594   : > { %3515 = vmatpush3.bf16.xpose.msra.mxu0 %v1417_v62 }
 0x595   : > { %3526 = vmatprep.subr.bf16.mxu0 %v3904_v15 }
 0x596   : > { %v1173_v63 = vpop.f32.mrb[4].mxu1  ;;  %v1348_v0 = vpop.f32.mrb[8].mxu0 }
 0x597   : > { %v3480_v1 = vpop.f32.mrb[5].mxu1  ;;  %v3504_v2 = vpop.f32.mrb[9].mxu0 }
 0x598   : > { %v1176_v3 = vpop.f32.mrb[6].mxu1  ;;  %v1351_v4 = vpop.f32.mrb[10].mxu0 }
 0x599   : > { %v1409_v5 = vpack.c.bf16 %v1176_v3, %v1173_v63  ;;  %v1557_v6 = vpack.c.bf16 %v1351_v4, %v1348_v0  ;;  %v3481_v8 = vpop.f32.mrb[7].mxu1  ;;  %v3505_v9 = vpop.f32.mrb[11].mxu0 }
 0x59b   : > { %3517 = vmatmul.mubr.msk.bf16.vlgmr.msra.gmra.mrb[12].mxu0 %vm1412_vm3, %v1408_v58 }
 0x59c   : > { %3527 = vmatpush3.bf16.msra.mxu0 %v1557_v6  ;;  %3528 = vmatprep.mubr.msk.bf16.mxu0 %vm3905_vm1, %v3904_v15 }
 0x59d   : > { %3538 = vmatprep.subr.bf16.mxu0 %v3904_v15 }
 0x59e   : > { %v1287_v11 = vpop.f32.mrb[8].mxu1 }
 0x59f   : > { %v3496_v12 = vpop.f32.mrb[9].mxu1 }
 0x5a0   : > { %v1290_v13 = vpop.f32.mrb[10].mxu1  ;;  %v3751_v12 = vld [vmem:[%s4609_s13 + $0x8] sm:$0xff]  }
 0x5a1   : > { %v1411_v14 = vpack.c.bf16 %v1290_v13, %v1287_v11  ;;  %v3497_v16 = vpop.f32.mrb[11].mxu1  ;;  %v3750_v11 = vld [vmem:[%s4609_s13] sm:$0xff]  }
 0x5a3   : > { %v1464_v17 = vsel %vm1412_vm3, %v1411_v14, 0 }
 0x5a4   : > { %3521 = vmatpush3.bf16.xpose.msra.mxu1 %v1464_v17 }
 0x5a5   : > { %3532 = vmatprep.subr.bf16.mxu1 %v3904_v15 }
 0x5a6   : > { %v1401_v18 = vpop.f32.mrb[12].mxu1 }
 0x5a7   : > { %v3512_v19 = vpop.f32.mrb[13].mxu1 }
 0x5a8   : > { %v1404_v20 = vpop.f32.mrb[14].mxu1 }
 0x5a9   : > { %v1558_v21 = vpack.c.bf16 %v1404_v20, %v1401_v18  ;;  %v3513_v22 = vpop.f32.mrb[15].mxu1 }
 0x5ab   : > { %3523 = vmatmul.mubr.msk.bf16.vlgmr.msra.gmra.mrb[16].mxu1 %vm1412_vm3, %v1409_v5 }
 0x5ac   : > { %3533 = vmatpush3.bf16.msra.mxu1 %v1558_v21  ;;  %3534 = vmatprep.mubr.msk.bf16.mxu1 %vm3905_vm1, %v3904_v15 }
 0x5ad   : > { %3544 = vmatprep.subr.bf16.mxu1 %v3904_v15 }
 0x66e   : > { %v1453_v23 = vpop.f32.mrb[12].mxu0 }
 0x66f   : > { %v1507_v24 = vmul.f32 0.25, %v1453_v23  ;;  %v3518_v25 = vpop.f32.mrb[13].mxu0 }
 0x670   : > { %v1456_v26 = vpop.f32.mrb[14].mxu0 }
 0x671   : > { %v1508_v27 = vmul.f32 0.25, %v1456_v26  ;;  %v3519_v28 = vpop.f32.mrb[15].mxu0  ;;  %v1511_v29 = vsel %vm1412_vm3, %v1507_v24, -inf }
 0x672   : > { %1512 = vmax.xlane.f32.xlu0 %v1511_v29 }
 0x673   : > { %v1514_v30 = vsel %vm1412_vm3, %v1508_v27, -inf }
 0x674   : > { %1515 = vmax.xlane.f32.xlu1 %v1514_v30 }
 0x67e   : > { %v1500_v31 = vpop.f32.mrb[16].mxu1 }
 0x67f   : > { %v1509_v32 = vmul.f32 0.25, %v1500_v31  ;;  %v3524_v33 = vpop.f32.mrb[17].mxu1 }
 0x680   : > { %v1503_v34 = vpop.f32.mrb[18].mxu1 }
 0x681   : > { %v1510_v35 = vmul.f32 0.25, %v1503_v34  ;;  %v3525_v36 = vpop.f32.mrb[19].mxu1  ;;  %v1517_v37 = vsel %vm1412_vm3, %v1509_v32, -inf }
 0x682   : > { %1518 = vmax.xlane.f32.xlu0 %v1517_v37  ;;  %v3255_v37 = vld [vmem:[%s4610_s14] ss:$0 sm:$0xff] }
 0x683   : > { %v1520_v38 = vsel %vm1412_vm3, %v1510_v35, -inf }
 0x684   : > { %1521 = vmax.xlane.f32.xlu1 %v1520_v38 }
 0x6ff   : > { %v1513_v39 = vpop.xlane.xlu0 %1512 }
 0x700   : > { %v1523_v40 = vsub.f32 %v1507_v24, %v1513_v39 }
 0x701   : > { %v1516_v41 = vpop.xlane.xlu1 %1515 }
 0x702   : > { %v1527_v42 = vmul.f32 1.442695, %v1523_v40  ;;  %v1524_v43 = vsub.f32 %v1508_v27, %v1516_v41 }
 0x704   : > { %3792 = vpow2.f32 %v1527_v42  ;;  %v1529_v44 = vmul.f32 1.442695, %v1524_v43 }
 0x706   : > { %3794 = vpow2.f32 %v1529_v44 }
 0x70e   : > { %v3793_v45 = vpop.eup %3792 }
 0x70f   : > { %v1519_v46 = vpop.xlane.xlu0 %1518  ;;  %v1535_v47 = vsel %vm1412_vm3, %v3793_v45, 0.0 }
 0x710   : > { %v3795_v48 = vpop.eup %3794  ;;  %v1525_v49 = vsub.f32 %v1509_v32, %v1519_v46  ;;  %1536 = vadd.xlane.f32.xlu0 %v1535_v47 }
 0x711   : > { %v1522_v50 = vpop.xlane.xlu1 %1521  ;;  %v1538_v51 = vsel %vm1412_vm3, %v3795_v48, 0.0 }
 0x712   : > { %v1531_v52 = vmul.f32 1.442695, %v1525_v49  ;;  %v1526_v53 = vsub.f32 %v1510_v35, %v1522_v50  ;;  %1539 = vadd.xlane.f32.xlu1 %v1538_v51 }
 0x714   : > { %3796 = vpow2.f32 %v1531_v52  ;;  %v1533_v54 = vmul.f32 1.442695, %v1526_v53  ;;  %v3752_v53 = vld [vmem:[%s4613_s17] sm:$0xff]  }
 0x716   : > { %3798 = vpow2.f32 %v1533_v54  ;;  %v3753_v54 = vld [vmem:[%s4613_s17 + $0x8] sm:$0xff]  }
 0x71e   : > { %v3797_v55 = vpop.eup %3796 }
 0x71f   : > { %v1541_v56 = vsel %vm1412_vm3, %v3797_v55, 0.0 }
 0x720   : > { %v3799_v57 = vpop.eup %3798  ;;  %1542 = vadd.xlane.f32.xlu0 %v1541_v56 }
 0x721   : > { %v1544_v58 = vsel %vm1412_vm3, %v3799_v57, 0.0 }
 0x722   : > { %1545 = vadd.xlane.f32.xlu1 %v1544_v58 }
 0x79d   : > { %v1537_v59 = vpop.xlane.xlu0 %1536 }
 0x79e   : > { %3800 = vrcp.f32 %v1537_v59 }
 0x79f   : > { %v1540_v60 = vpop.xlane.xlu1 %1539 }
 0x7a0   : > { %3802 = vrcp.f32 %v1540_v60 }
 0x7a8   : > { %v3801_v61 = vpop.eup %3800 }
 0x7a9   : > { %v1551_v63 = vmul.f32 %v3801_v61, %v3793_v45 }
 0x7aa   : > { %v3803_v62 = vpop.eup %3802 }
 0x7ab   : > { %v1552_v0 = vmul.f32 %v3803_v62, %v3795_v48  ;;  %v3256_v62 = vld [vmem:[%s4611_s15] ss:$0 sm:$0xff] }
 0x7ad   : > { %v1543_v1 = vpop.xlane.xlu0 %1542  ;;  %v1555_v2 = vpack.c.bf16 %v1552_v0, %v1551_v63 }
 0x7ae   : > { %3804 = vrcp.f32 %v1543_v1 }
 0x7af   : > { %3529 = vmatmul.mubr.msk.bf16.vlgmr.msra.gmra.mrb[16].mxu0 %vm1412_vm3, %v1555_v2  ;;  %v1546_v3 = vpop.xlane.xlu1 %1545 }
 0x7b0   : > { %3806 = vrcp.f32 %v1546_v3  ;;  %3540 = vmatprep.mubr.msk.bf16.mxu0 %vm3905_vm1, %v3904_v15  ;;  %3539 = vmatpush3.bf16.msra.mxu0 %v3750_v11  ;;  %v3257_v3 = vld [vmem:[%s4612_s16] ss:$0 sm:$0xff]  ;;  %v3755_v11 = vld [vmem:[%s4615_s19 + $0x8] sm:$0xff]  }
 0x7b1   : > { %3550 = vmatprep.subr.bf16.mxu0 %v3904_v15 }
 0x7b8   : > { %v3805_v4 = vpop.eup %3804 }
 0x7b9   : > { %v1553_v6 = vmul.f32 %v3805_v4, %v3797_v55 }
 0x7ba   : > { %v3807_v5 = vpop.eup %3806 }
 0x7bb   : > { %v1554_v8 = vmul.f32 %v3807_v5, %v3799_v57 }
 0x7bd   : > { %v1556_v9 = vpack.c.bf16 %v1554_v8, %v1553_v6 }
 0x7bf   : > { %3535 = vmatmul.mubr.msk.bf16.vlgmr.msra.gmra.mrb[20].mxu1 %vm1412_vm3, %v1556_v9  ;;  %v3754_v9 = vld [vmem:[%s4615_s19] sm:$0xff]  }
 0x7c0   : > { %3546 = vmatprep.mubr.msk.bf16.mxu1 %vm3905_vm1, %v3904_v15  ;;  %3545 = vmatpush3.bf16.msra.mxu1 %v3751_v12  ;;  %v3756_v12 = vld [vmem:[%s4615_s19 + $0x10] sm:$0xff]  }
 0x7c1   : > { %3558 = vmatprep.subr.bf16.mxu1 %v3904_v15 }
 0x882   : > { %v1596_v13 = vpop.f32.mrb[16].mxu0 }
 0x883   : > { %v3530_v14 = vpop.f32.mrb[17].mxu0 }
 0x884   : > { %v1599_v16 = vpop.f32.mrb[18].mxu0  ;;  %v3258_v14 = vld [vmem:[%s4614_s18] ss:$0 sm:$0xff] }
 0x885   : > { %v1647_v17 = vpack.c.bf16 %v1599_v16, %v1596_v13  ;;  %v3531_v18 = vpop.f32.mrb[19].mxu0  ;;  %v3757_v13 = vld [vmem:[%s4615_s19 + $0x18] sm:$0xff]  }
 0x887   : > { %3541 = vmatmul.mubr.msk.bf16.vlgmr.msra.gmra.mrb[20].mxu0 %vm1412_vm3, %v1647_v17 }
 0x888   : > { %3554 = vmatprep.mubr.msk.bf16.mxu0 %vm3905_vm1, %v3904_v15  ;;  %3551 = vmatpush3.bf16.msra.mxu0 %v3752_v53 }
 0x889   : > { %3552 = vmatprep.subr.bf16.mxu0 %v3904_v15 }
 0x88c   : > { %3553 = vmatpush3.bf16.msra.mxu0 %v3753_v54 }
 0x88d   : > { %3570 = vmatprep.subr.bf16.mxu0 %v3904_v15 }
 0x892   : > { %v1640_v19 = vpop.f32.mrb[20].mxu1 }
 0x893   : > { %v3536_v20 = vpop.f32.mrb[21].mxu1 }
 0x894   : > { %v1643_v21 = vpop.f32.mrb[22].mxu1 }
 0x895   : > { %v1648_v22 = vpack.c.bf16 %v1643_v21, %v1640_v19  ;;  %v3537_v23 = vpop.f32.mrb[23].mxu1 }
 0x897   : > { %3547 = vmatmul.mubr.msk.bf16.vlgmr.msra.gmra.mrb[24].mxu1 %vm1412_vm3, %v1648_v22 }
 0x898   : > { %3566 = vmatprep.mubr.msk.bf16.mxu1 %vm3905_vm1, %v3904_v15  ;;  %3559 = vmatpush3.bf16.msra.mxu1 %v3754_v9  ;;  %v3269_v9 = vld [vmem:[%s4619_s23] ss:$0 sm:$0xff] }
 0x899   : > { %3560 = vmatprep.subr.bf16.mxu1 %v3904_v15 }
 0x89c   : > { %3561 = vmatpush3.bf16.msra.mxu1 %v3755_v11 }
 0x89d   : > { %3562 = vmatprep.subr.bf16.mxu1 %v3904_v15 }
 0x8a0   : > { %3563 = vmatpush3.bf16.msra.mxu1 %v3756_v12 }
 0x8a1   : > { %3564 = vmatprep.subr.bf16.mxu1 %v3904_v15 }
 0x8a4   : > { %3565 = vmatpush3.bf16.msra.mxu1 %v3757_v13 }
 0x8a5   : > { %3582 = vmatprep.subr.bf16.mxu1 %v3904_v15 }
 0x95a   : > { %v1696_v24 = vpop.f32.mrb[20].mxu0 }
 0x95b   : > { %v3542_v25 = vpop.f32.mrb[21].mxu0  ;;  %v1753_v29 = vsel %vm970_vm2, %v1696_v24, 0.0 }
 0x95c   : > { %v1699_v26 = vpop.f32.mrb[22].mxu0 }
 0x95d   : > { %v3543_v27 = vpop.f32.mrb[23].mxu0  ;;  %v1756_v34 = vsel %vm970_vm2, %v1699_v26, 0.0 }
 0x96a   : > { %v1746_v28 = vpop.f32.mrb[24].mxu1 }
 0x96b   : > { %v1754_v30 = vsel %vm970_vm2, %v1746_v28, 0.0  ;;  %v3548_v31 = vpop.f32.mrb[25].mxu1 }
 0x96c   : > { %v1755_v32 = vadd.f32 %v1754_v30, %v1753_v29  ;;  %v1749_v33 = vpop.f32.mrb[26].mxu1 }
 0x96d   : > { %v1757_v35 = vsel %vm970_vm2, %v1749_v33, 0.0  ;;  %v3549_v36 = vpop.f32.mrb[27].mxu1 }
 0x96e   : > { %v1759_v38 = vadd.f32 %v1755_v32, %v4155_v7  ;;  %v1758_v39 = vadd.f32 %v1757_v35, %v1756_v34 }
 0x970   : > { %v1760_v40 = vadd.f32 %v1758_v39, %v4159_v10  ;;  %v4288_v41 = vadd.f32 %v3255_v37, %v1759_v38 }
 0x972   : > { %v1772_v42 = vsel %vm970_vm2, %v4288_v41, 0.0  ;;  %v4292_v43 = vadd.f32 %v3255_v37, %v1760_v40 }
 0x973   : > { %1773 = vadd.xlane.f32.xlu0 %v1772_v42 }
 0x974   : > { %v1775_v44 = vsel %vm970_vm2, %v4292_v43, 0.0 }
 0x975   : > { %1776 = vadd.xlane.f32.xlu1 %v1775_v44  ;;  %v3267_v44 = vld [vmem:[%s4616_s20] ss:$0 sm:$0xff] }
 0xa00   : > { %v1774_v45 = vpop.xlane.xlu0 %1773 }
 0xa01   : > { %v1778_v46 = vmul.f32 0.03125, %v1774_v45 }
 0xa02   : > { %v1777_v47 = vpop.xlane.xlu1 %1776 }
 0xa03   : > { %v1780_v7 = vsub.f32 %v4288_v41, %v1778_v46  ;;  %v1779_v48 = vmul.f32 0.03125, %v1777_v47 }
 0xa05   : > { %v1781_v10 = vsub.f32 %v4292_v43, %v1779_v48  ;;  %v1782_v49 = vmul.f32 %v1780_v7, %v1780_v7 }
 0xa07   : > { %v1784_v50 = vsel %vm970_vm2, %v1782_v49, 0.0  ;;  %v1783_v51 = vmul.f32 %v1781_v10, %v1781_v10 }
 0xa08   : > { %1785 = vadd.xlane.f32.xlu0 %v1784_v50 }
 0xa09   : > { %v1787_v52 = vsel %vm970_vm2, %v1783_v51, 0.0 }
 0xa0a   : > { %1788 = vadd.xlane.f32.xlu1 %v1787_v52 }
 0xa95   : > { %v1786_v55 = vpop.xlane.xlu0 %1785 }
 0xa96   : > { %v1790_v56 = vmul.f32 0.03125, %v1786_v55 }
 0xa97   : > { %v1789_v57 = vpop.xlane.xlu1 %1788 }
 0xa98   : > { %v1792_v58 = vadd.f32 1e-05, %v1790_v56  ;;  %v1791_v59 = vmul.f32 0.03125, %v1789_v57 }
 0xa9a   : > { %3808 = vrsqrt.f32 %v1792_v58  ;;  %v1793_v60 = vadd.f32 1e-05, %v1791_v59 }
 0xa9c   : > { %3810 = vrsqrt.f32 %v1793_v60 }
 0xaa4   : > { %v3809_v61 = vpop.eup %3808 }
 0xaa5   : > { %v1796_v63 = vmul.f32 %v3809_v61, %v1780_v7 }
 0xaa6   : > { %v3811_v0 = vpop.eup %3810 }
 0xaa7   : > { %v1804_v1 = vmul.f32 %v3256_v62, %v1796_v63  ;;  %v1797_v2 = vmul.f32 %v3811_v0, %v1781_v10 }
 0xaa9   : > { %v1805_v4 = vmul.f32 %v3256_v62, %v1797_v2  ;;  %v1812_v5 = vadd.f32 %v3257_v3, %v1804_v1 }
 0xaab   : > { %v1813_v6 = vadd.f32 %v3257_v3, %v1805_v4  ;;  %v3268_v3 = vld [vmem:[%s4618_s22] ss:$0 sm:$0xff] }
 0xaad   : > { %v1814_v8 = vpack.c.bf16 %v1813_v6, %v1812_v5 }
 0xaaf   : > { %3555 = vmatmul.mubr.msk.bf16.vlgmr.msra.gmra.mrb[24].mxu0 %vm970_vm2, %v1814_v8 }
 0xab0   : > { %3572 = vmatprep.mubr.msk.bf16.mxu0 %vm3905_vm1, %v3904_v15 }
 0xb82   : > { %v1875_v16 = vpop.f32.mrb[24].mxu0 }
 0xb83   : > { %v1876_v17 = vadd.f32 %v3258_v14, %v1875_v16  ;;  %v3556_v18 = vpop.f32.mrb[25].mxu0 }
 0xb84   : > { %v1878_v19 = vpop.f32.mrb[26].mxu0 }
 0xb85   : > { %v1884_v20 = vmul.f32 0.044715, %v1876_v17  ;;  %v1879_v21 = vadd.f32 %v3258_v14, %v1878_v19  ;;  %v3557_v22 = vpop.f32.mrb[27].mxu0  ;;  %v1882_v35 = vmul.f32 0.5, %v1876_v17 }
 0xb87   : > { %v1886_v23 = vmul.f32 %v1884_v20, %v1876_v17  ;;  %v1885_v24 = vmul.f32 0.044715, %v1879_v21  ;;  %v1883_v36 = vmul.f32 0.5, %v1879_v21 }
 0xb89   : > { %v1888_v25 = vmul.f32 %v1886_v23, %v1876_v17  ;;  %v1887_v26 = vmul.f32 %v1885_v24, %v1879_v21 }
 0xb8b   : > { %v1890_v27 = vadd.f32 %v1888_v25, %v1876_v17  ;;  %v1889_v28 = vmul.f32 %v1887_v26, %v1879_v21  ;;  %v2034_v17 = vld [vmem:[%s4617_s21] sm:$0xf] }
 0xb8d   : > { %v1892_v29 = vmul.f32 0.7978846, %v1890_v27  ;;  %v1891_v30 = vadd.f32 %v1889_v28, %v1879_v21 }
 0xb8f   : > { %3812 = vtanh.f32 %v1892_v29  ;;  %v1893_v31 = vmul.f32 0.7978846, %v1891_v30 }
 0xb91   : > { %3814 = vtanh.f32 %v1893_v31 }
 0xb99   : > { %v3813_v32 = vpop.eup %3812 }
 0xb9a   : > { %v1896_v33 = vadd.f32 1.0, %v3813_v32 }
 0xb9b   : > { %v3815_v34 = vpop.eup %3814 }
 0xb9c   : > { %v1897_v37 = vadd.f32 1.0, %v3815_v34  ;;  %v1898_v38 = vmul.f32 %v1896_v33, %v1882_v35 }
 0xb9e   : > { %v1899_v39 = vmul.f32 %v1897_v37, %v1883_v36 }
 0xba0   : > { %v1900_v40 = vpack.c.bf16 %v1899_v39, %v1898_v38 }
 0xba2   : > { %3567 = vmatmul.mubr.msk.bf16.vlgmr.msra.gmra.mrb[28].mxu1 %vm1933_vm4, %v1900_v40 }
 0xba3   : > { %3586 = vmatprep.mubr.msk.bf16.mxu1 %vm3905_vm1, %v3904_v15 }
 0xc75   : > { %v1971_v42 = vpop.f32.mrb[28].mxu1 }
 0xc76   : > { %v1978_v45 = vadd.f32 %v1971_v42, %v4288_v41  ;;  %v3568_v46 = vpop.f32.mrb[29].mxu1 }
 0xc77   : > { %v1974_v47 = vpop.f32.mrb[30].mxu1  ;;  %v3759_v46 = vld [vmem:[%s4678_s4 + $0x30] sm:$0xff]  }
 0xc78   : > { %v1979_v7 = vadd.f32 %v1974_v47, %v4292_v43  ;;  %v3569_v48 = vpop.f32.mrb[31].mxu1  ;;  %v1987_v10 = vadd.f32 %v3267_v44, %v1978_v45  ;;  %v3758_v45 = vld [vmem:[%s4678_s4 + $0x20] sm:$0xff]   ;;  %v3760_v47 = vld [vmem:[%s4678_s4 + $0x28] sm:$0xff]  }
 0xc79   : > { %3583 = vmatpush3.bf16.msra.mxu1 %v3758_v45 }
 0xc7a   : > { %v1991_v49 = vsel %vm970_vm2, %v1987_v10, 0.0  ;;  %v1988_v50 = vadd.f32 %v3267_v44, %v1979_v7  ;;  %3584 = vmatprep.subr.bf16.mxu1 %v3904_v15  ;;  %v3761_v7 = vld [vmem:[%s4678_s4 + $0x38] sm:$0xff]   ;;  %s3844_s4 = sshll.u32 %s3906_s8, 4  ;;  %s3845_s4 = int_to_ptr.vmem [resolvable:$false] %s3844_s4 }
 0xc7b   : > { %1992 = vadd.xlane.f32.xlu0 %v1991_v49  ;;  %s3846_s30 = scalar_lea.vmem %s3845_s4, 32  ;;  %p3847_p0 = scmp.lt.s32.totalorder %s4556_s28, %s3845_s4 }
 0xc7c   : > { %v1994_v51 = vsel %vm970_vm2, %v1988_v50, 0.0  ;;  %p3848_p1 = scmp.lt.s32.totalorder %s3846_s30, %s3840_s29 }
 0xc7d   : > { %1995 = vadd.xlane.f32.xlu1 %v1994_v51  ;;  %3585 = vmatpush3.bf16.msra.mxu1 %v3760_v47  ;;  %v3274_v51 = vld [vmem:[%s4681_s12 + $0x1] ss:$0 sm:$0xff] }
 0xc7e   : > { %3598 = vmatprep.subr.bf16.mxu1 %v3904_v15  ;;  %p3849_p2 = por %p3848_p1, %p3847_p0 }
 0xc80   : > { %p3850_p3 = pnand %p3849_p2, %p3843_p13 }
 0xd08   : > { %v1993_v52 = vpop.xlane.xlu0 %1992 }
 0xd09   : > { %v1997_v53 = vmul.f32 0.03125, %v1993_v52 }
 0xd0a   : > { %v1996_v54 = vpop.xlane.xlu1 %1995 }
 0xd0b   : > { %v1999_v55 = vsub.f32 %v1987_v10, %v1997_v53  ;;  %v1998_v56 = vmul.f32 0.03125, %v1996_v54  ;;  %v3275_v53 = vld [vmem:[%s4682_s0 + $0x1] ss:$0 sm:$0xff]  ;;  %s4685_s0 = sld [smem:[#allocation25_spill]] }
 0xd0d   : > { %v2000_v57 = vsub.f32 %v1988_v50, %v1998_v56  ;;  %v2001_v41 = vmul.f32 %v1999_v55, %v1999_v55  ;;  %v3762_v56 = vld [vmem:[%s4679_s6 + $0x20] sm:$0xff]  }
 0xd0f   : > { %v2003_v58 = vsel %vm970_vm2, %v2001_v41, 0.0  ;;  %v2002_v59 = vmul.f32 %v2000_v57, %v2000_v57 }
 0xd10   : > { %2004 = vadd.xlane.f32.xlu0 %v2003_v58  ;;  %v3764_v58 = vld [vmem:[%s4679_s6 + $0x28] sm:$0xff]  }
 0xd11   : > { %v2006_v43 = vsel %vm970_vm2, %v2002_v59, 0.0  ;;  %v3765_v59 = vld [vmem:[%s4679_s6 + $0x38] sm:$0xff]  }
 0xd12   : > { %2007 = vadd.xlane.f32.xlu1 %v2006_v43  ;;  %v3766_v43 = vld [vmem:[%s4683_s2 + $0x20] sm:$0xff]  }
 0xd9d   : > { %v2005_v60 = vpop.xlane.xlu0 %2004 }
 0xd9e   : > { %v2009_v61 = vmul.f32 0.03125, %v2005_v60  ;;  %v3767_v60 = vld [vmem:[%s4683_s2 + $0x30] sm:$0xff]  }
 0xd9f   : > { %v2008_v62 = vpop.xlane.xlu1 %2007 }
 0xda0   : > { %v2011_v63 = vadd.f32 1e-05, %v2009_v61  ;;  %v2010_v0 = vmul.f32 0.03125, %v2008_v62  ;;  %v3768_v61 = vld [vmem:[%s4683_s2 + $0x28] sm:$0xff]   ;;  %v3769_v62 = vld [vmem:[%s4683_s2 + $0x38] sm:$0xff]   ;;  %s4554_s2 = scalar_lea.hbm %s4685_s0, %s3365_s9 }
 0xda2   : > { %3816 = vrsqrt.f32 %v2011_v63  ;;  %v2012_v1 = vadd.f32 1e-05, %v2010_v0 }
 0xda4   : > { %3818 = vrsqrt.f32 %v2012_v1 }
 0xdac   : > { %v3817_v2 = vpop.eup %3816 }
 0xdad   : > { %v2015_v4 = vmul.f32 %v3817_v2, %v1999_v55 }
 0xdae   : > { %v3819_v5 = vpop.eup %3818 }
 0xdaf   : > { %v2016_v6 = vmul.f32 %v3819_v5, %v2000_v57  ;;  %v2023_v8 = vmul.f32 %v3268_v3, %v2015_v4  ;;  %v3763_v57 = vld [vmem:[%s4679_s6 + $0x30] sm:$0xff]  }
 0xdb1   : > { %v2024_v11 = vmul.f32 %v3268_v3, %v2016_v6  ;;  %v2031_v12 = vadd.f32 %v3269_v9, %v2023_v8 }
 0xdb3   : > { %v2032_v13 = vadd.f32 %v3269_v9, %v2024_v11 }
 0xdb5   : > { %v2033_v14 = vpack.c.bf16 %v2032_v13, %v2031_v12 }
 0xdb7   : > { %v2039_v16 = vsel %vm970_vm2, %v2033_v14, 0 }
 0xdb8   : > { %3571 = vmatpush3.bf16.xpose.msra.mxu0 %v2039_v16 }
 0xdb9   : > { %3576 = vmatprep.subr.bf16.mxu0 %v3904_v15 }
 0xdbf   : > { %3573 = vmatmul.mubr.msk.bf16.vlgmr.msra.gmra.mrb[28].mxu0 %vm970_vm2, %v2034_v17 }
 0xdc0   : > { %3577 = vmatpush3.bf16.msra.mxu0 %v2033_v14  ;;  %3578 = vmatprep.mubr.msk.bf16.mxu0 %vm3905_vm1, %v3904_v15 }
 0xdc1   : > { %3590 = vmatprep.subr.bf16.mxu0 %v3904_v15 }
 0xe92   : > { %v2075_v18 = vpop.f32.mrb[28].mxu0 }
 0xe93   : > { %v2081_v19 = vmul.f32 0.17677669, %v2075_v18  ;;  %v3574_v20 = vpop.f32.mrb[29].mxu0 }
 0xe94   : > { %v2078_v21 = vpop.f32.mrb[30].mxu0 }
 0xe95   : > { %v3575_v22 = vpop.f32.mrb[31].mxu0  ;;  %v2082_v23 = vsel %vm1412_vm3, %v2081_v19, -inf }
 0xe96   : > { %2083 = vmax.xlane.f32.xlu0 %v2082_v23 }
 0xf23   : > { %v2084_v24 = vpop.xlane.xlu0 %2083 }
 0xf24   : > { %v2085_v25 = vsub.f32 %v2081_v19, %v2084_v24 }
 0xf26   : > { %v2086_v26 = vmul.f32 1.442695, %v2085_v25 }
 0xf28   : > { %3820 = vpow2.f32 %v2086_v26 }
 0xf32   : > { %v3821_v27 = vpop.eup %3820 }
 0xf33   : > { %v2088_v28 = vsel %vm1412_vm3, %v3821_v27, 0.0 }
 0xf34   : > { %2089 = vadd.xlane.f32.xlu1 %v2088_v28 }
 0xfc1   : > { %v2090_v29 = vpop.xlane.xlu1 %2089 }
 0xfc2   : > { %3822 = vrcp.f32 %v2090_v29 }
 0xfcc   : > { %v3823_v30 = vpop.eup %3822 }
 0xfcd   : > { %v2092_v31 = vmul.f32 %v3823_v30, %v3821_v27 }
 0xfcf   : > { %v2093_v32 = vpack.c.bf16 %v2092_v31, %v2092_v31 }
 0xfd1   : > { %3579 = vmatmul.mubr.msk.bf16.vlgmr.msra.gmra.mrb[32].mxu0 %vm1412_vm3, %v2093_v32 }
 0xfd2   : > { %3594 = vmatprep.mubr.msk.bf16.mxu0 %vm3905_vm1, %v3904_v15  ;;  %3591 = vmatpush3.bf16.msra.mxu0 %v3759_v46 }
 0xfd3   : > { %3592 = vmatprep.subr.bf16.mxu0 %v3904_v15 }
 0xfd6   : > { %3593 = vmatpush3.bf16.msra.mxu0 %v3761_v7 }
 0xfd7   : > { %3606 = vmatprep.subr.bf16.mxu0 %v3904_v15 }
0x10a4   : > { %v4368_v33 = vpop.f32.mrb[32].mxu0 }
0x10a5   : > { %v3580_v34 = vpop.f32.mrb[33].mxu0  ;;  %v2141_v35 = vsel %vm970_vm2, %v4368_v33, 0.0 }
0x10a6   : > { %2142 = vadd.xlane.f32.xlu0 %v2141_v35  ;;  %v2134_v36 = vpop.f32.mrb[34].mxu0 }
0x10a7   : > { %v3581_v37 = vpop.f32.mrb[35].mxu0 }
0x1133   : > { %v2143_v38 = vpop.xlane.xlu0 %2142 }
0x1134   : > { %v2144_v39 = vmul.f32 0.03125, %v2143_v38 }
0x1136   : > { %v2145_v40 = vsub.f32 %v4368_v33, %v2144_v39 }
0x1138   : > { %v2146_v42 = vmul.f32 %v2145_v40, %v2145_v40 }
0x113a   : > { %v2147_v44 = vsel %vm970_vm2, %v2146_v42, 0.0 }
0x113b   : > { %2148 = vadd.xlane.f32.xlu1 %v2147_v44 }
0x11c8   : > { %v2149_v48 = vpop.xlane.xlu1 %2148 }
0x11c9   : > { %v2150_v10 = vmul.f32 0.03125, %v2149_v48 }
0x11cb   : > { %v2151_v49 = vadd.f32 1e-05, %v2150_v10 }
0x11cd   : > { %3824 = vrsqrt.f32 %v2151_v49 }
0x11d7   : > { %v3825_v50 = vpop.eup %3824 }
0x11d8   : > { %v2153_v52 = vmul.f32 %v3825_v50, %v2145_v40 }
0x11da   : > { %v2160_v54 = vmul.f32 %v3274_v51, %v2153_v52 }
0x11dc   : > { %v2167_v55 = vadd.f32 %v3275_v53, %v2160_v54 }
0x11de   : > { %v2168_v41 = vpack.c.bf16 %v2167_v55, %v2167_v55 }
0x11e0   : > { %3587 = vmatmul.mubr.msk.bf16.vlgmr.msra.gmra.mrb[32].mxu1 %vm970_vm2, %v2168_v41  ;;  %3595 = vmatmul.mubr.msk.bf16.vlgmr.msra.gmra.mrb[36].mxu0 %vm970_vm2, %v2168_v41 }
0x11e1   : > { %3599 = vmatpush3.bf16.msra.mxu1 %v3762_v56  ;;  %3607 = vmatpush3.bf16.msra.mxu0 %v3763_v57 }
0x11e2   : > { %3600 = vmatprep.subr.bf16.mxu1 %v3904_v15  ;;  %3608 = vmatprep.subr.bf16.mxu0 %v3904_v15 }
0x11e3   : > { %3602 = vmatprep.mubr.msk.bf16.mxu1 %vm3905_vm1, %v3904_v15  ;;  %3610 = vmatprep.mubr.msk.bf16.mxu0 %vm3905_vm1, %v3904_v15 }
0x11e5   : > { %3601 = vmatpush3.bf16.msra.mxu1 %v3764_v58  ;;  %3609 = vmatpush3.bf16.msra.mxu0 %v3765_v59 }
0x11e6   : > { %3614 = vmatprep.subr.bf16.mxu1 %v3904_v15  ;;  %3622 = vmatprep.subr.bf16.mxu0 %v3904_v15 }
0x11e8   : > { %3603 = vmatmul.mubr.msk.bf16.vlgmr.msra.gmra.mrb[36].mxu1 %vm970_vm2, %v2168_v41  ;;  %3611 = vmatmul.mubr.msk.bf16.vlgmr.msra.gmra.mrb[40].mxu0 %vm970_vm2, %v2168_v41 }
0x11e9   : > { %3615 = vmatpush3.bf16.msra.mxu1 %v3766_v43  ;;  %3623 = vmatpush3.bf16.msra.mxu0 %v3767_v60 }
0x11ea   : > { %3616 = vmatprep.subr.bf16.mxu1 %v3904_v15  ;;  %3624 = vmatprep.subr.bf16.mxu0 %v3904_v15 }
0x11eb   : > { %3618 = vmatprep.mubr.msk.bf16.mxu1 %vm3905_vm1, %v3904_v15  ;;  %3626 = vmatprep.mubr.msk.bf16.mxu0 %vm3905_vm1, %v3904_v15 }
0x11ed   : > { %3617 = vmatpush3.bf16.msra.mxu1 %v3768_v61  ;;  %3625 = vmatpush3.bf16.msra.mxu0 %v3769_v62 }
0x11ee   : > { %3630 = vmatprep.subr.bf16.mxu1 %v3904_v15  ;;  %3636 = vmatprep.subr.bf16.mxu0 %v3904_v15 }
0x11f0   : > { %3619 = vmatmul.mubr.msk.bf16.vlgmr.msra.gmra.mrb[40].mxu1 %vm970_vm2, %v2168_v41  ;;  %3627 = vmatmul.mubr.msk.bf16.vlgmr.msra.gmra.mrb[44].mxu0 %vm970_vm2, %v2168_v41 }
0x11f1   : > { %3632 = vmatprep.mubr.msk.bf16.mxu1 %vm3905_vm1, %v3904_v15  ;;  %3638 = vmatprep.mubr.msk.bf16.mxu0 %vm3905_vm1, %v3904_v15 }
0x12b3   : > { %v2227_v63 = vpop.f32.mrb[32].mxu1  ;;  %v2279_v0 = vpop.f32.mrb[36].mxu0 }
0x12b4   : > { %v3588_v1 = vpop.f32.mrb[33].mxu1  ;;  %v3596_v2 = vpop.f32.mrb[37].mxu0  ;;  %v2511_v24 = vpack.c.bf16 %v2227_v63, %v2227_v63  ;;  %v2512_v25 = vpack.c.bf16 %v2279_v0, %v2279_v0  ;;  %v3770_v63 = vld [vmem:[%s4609_s13 + $0x10] sm:$0xff]  }
0x12b5   : > { %v2230_v3 = vpop.f32.mrb[34].mxu1  ;;  %v2282_v4 = vpop.f32.mrb[38].mxu0  ;;  %v3771_v1 = vld [vmem:[%s4609_s13 + $0x18] sm:$0xff]  }
0x12b6   : > { %v3589_v5 = vpop.f32.mrb[35].mxu1  ;;  %v3597_v6 = vpop.f32.mrb[39].mxu0 }
0x12bb   : > { %v2340_v8 = vpop.f32.mrb[36].mxu1  ;;  %v2392_v9 = vpop.f32.mrb[40].mxu0 }
0x12bc   : > { %v2513_v11 = vpack.c.bf16 %v2340_v8, %v2340_v8  ;;  %v2514_v12 = vpack.c.bf16 %v2392_v9, %v2392_v9  ;;  %v3604_v13 = vpop.f32.mrb[37].mxu1  ;;  %v3612_v14 = vpop.f32.mrb[41].mxu0 }
0x12bd   : > { %v2343_v16 = vpop.f32.mrb[38].mxu1  ;;  %v2395_v17 = vpop.f32.mrb[42].mxu0 }
0x12be   : > { %v2519_v18 = vsel %vm1412_vm3, %v2513_v11, 0  ;;  %v2565_v19 = vsel %vm1412_vm3, %v2514_v12, 0  ;;  %v3605_v20 = vpop.f32.mrb[39].mxu1  ;;  %v3613_v21 = vpop.f32.mrb[43].mxu0 }
0x12bf   : > { %3631 = vmatpush3.bf16.xpose.msra.mxu1 %v2519_v18  ;;  %3637 = vmatpush3.bf16.xpose.msra.mxu0 %v2565_v19 }
0x12c0   : > { %3642 = vmatprep.subr.bf16.mxu1 %v3904_v15  ;;  %3648 = vmatprep.subr.bf16.mxu0 %v3904_v15 }
0x12c3   : > { %v2453_v22 = vpop.f32.mrb[40].mxu1  ;;  %v2505_v23 = vpop.f32.mrb[44].mxu0 }
0x12c4   : > { %v2634_v26 = vpack.c.bf16 %v2453_v22, %v2453_v22  ;;  %v2635_v27 = vpack.c.bf16 %v2505_v23, %v2505_v23  ;;  %v3620_v28 = vpop.f32.mrb[41].mxu1  ;;  %v3628_v29 = vpop.f32.mrb[45].mxu0 }
0x12c5   : > { %v2456_v30 = vpop.f32.mrb[42].mxu1  ;;  %v2508_v31 = vpop.f32.mrb[46].mxu0 }
0x12c6   : > { %v2641_v32 = vsel %vm2639_vm5, %v2634_v26, 0  ;;  %v2687_v34 = vsel %vm2639_vm5, %v2635_v27, 0  ;;  %v3621_v35 = vpop.f32.mrb[43].mxu1  ;;  %v3629_v36 = vpop.f32.mrb[47].mxu0  ;;  %3633 = vmatmul.mubr.msk.bf16.vlgmr.msra.gmra.mrb[44].mxu1 %vm1412_vm3, %v2511_v24  ;;  %3639 = vmatmul.mubr.msk.bf16.vlgmr.msra.gmra.mrb[48].mxu0 %vm1412_vm3, %v2512_v25  ;;  %v3331_v27 = vld [vmem:[%s4610_s14 + $0x1] ss:$0 sm:$0xff] }
0x12c7   : > { %3643 = vmatpush3.bf16.msra.mxu1 %v2641_v32  ;;  %3649 = vmatpush3.bf16.msra.mxu0 %v2687_v34 }
0x12c8   : > { %3644 = vmatprep.mubr.msk.bf16.mxu1 %vm3905_vm1, %v3904_v15  ;;  %3650 = vmatprep.mubr.msk.bf16.mxu0 %vm3905_vm1, %v3904_v15 }
0x12c9   : > { %3654 = vmatprep.subr.bf16.mxu1 %v3904_v15  ;;  %3660 = vmatprep.subr.bf16.mxu0 %v3904_v15 }
0x1399   : > { %v2555_v37 = vpop.f32.mrb[44].mxu1  ;;  %v2601_v38 = vpop.f32.mrb[48].mxu0 }
0x139a   : > { %v2607_v39 = vmul.f32 0.25, %v2555_v37  ;;  %v2608_v40 = vmul.f32 0.25, %v2601_v38  ;;  %v3634_v42 = vpop.f32.mrb[45].mxu1  ;;  %v3640_v44 = vpop.f32.mrb[49].mxu0  ;;  %v3772_v37 = vld [vmem:[%s4613_s17 + $0x10] sm:$0xff]  }
0x139b   : > { %v2558_v45 = vpop.f32.mrb[46].mxu1  ;;  %v2604_v46 = vpop.f32.mrb[50].mxu0  ;;  %v3334_v44 = vld [vmem:[%s4611_s15 + $0x1] ss:$0 sm:$0xff] }
0x139c   : > { %v3635_v47 = vpop.f32.mrb[47].mxu1  ;;  %v3641_v7 = vpop.f32.mrb[51].mxu0  ;;  %v2610_v48 = vsel %vm2609_vm6, %v2607_v39, -inf  ;;  %v2613_v10 = vsel %vm2609_vm6, %v2608_v40, -inf  ;;  %v3335_v46 = vld [vmem:[%s4612_s16 + $0x1] ss:$0 sm:$0xff] }
0x139d   : > { %2611 = vmax.xlane.f32.xlu0 %v2610_v48  ;;  %2614 = vmax.xlane.f32.xlu1 %v2613_v10  ;;  %v3774_v10 = vld [vmem:[%s4615_s19 + $0x20] sm:$0xff]  }
0x142a   : > { %v2612_v49 = vpop.xlane.xlu0 %2611  ;;  %v2615_v50 = vpop.xlane.xlu1 %2614 }
0x142b   : > { %v2616_v51 = vsub.f32 %v2607_v39, %v2612_v49  ;;  %v2617_v52 = vsub.f32 %v2608_v40, %v2615_v50  ;;  %v3775_v49 = vld [vmem:[%s4615_s19 + $0x28] sm:$0xff]   ;;  %v3776_v50 = vld [vmem:[%s4615_s19 + $0x30] sm:$0xff]  }
0x142d   : > { %v2618_v53 = vmul.f32 1.442695, %v2616_v51  ;;  %v2620_v54 = vmul.f32 1.442695, %v2617_v52  ;;  %v3777_v51 = vld [vmem:[%s4615_s19 + $0x38] sm:$0xff]  }
0x142e   : > { %v3341_v52 = vld [vmem:[%s4614_s18 + $0x1] ss:$0 sm:$0xff] }
0x142f   : > { %3826 = vpow2.f32 %v2618_v53 }
0x1430   : > { %3828 = vpow2.f32 %v2620_v54 }
0x1439   : > { %v3827_v55 = vpop.eup %3826 }
0x143a   : > { %v3829_v56 = vpop.eup %3828  ;;  %v2622_v57 = vsel %vm2609_vm6, %v3827_v55, 0.0 }
0x143b   : > { %2623 = vadd.xlane.f32.xlu0 %v2622_v57  ;;  %v2625_v41 = vsel %vm2609_vm6, %v3829_v56, 0.0 }
0x143c   : > { %2626 = vadd.xlane.f32.xlu1 %v2625_v41 }
0x14c8   : > { %v2624_v58 = vpop.xlane.xlu0 %2623 }
0x14c9   : > { %3830 = vrcp.f32 %v2624_v58  ;;  %v2627_v59 = vpop.xlane.xlu1 %2626 }
0x14ca   : > { %3832 = vrcp.f32 %v2627_v59 }
0x14d3   : > { %v3831_v43 = vpop.eup %3830 }
0x14d4   : > { %v3833_v60 = vpop.eup %3832  ;;  %v2630_v61 = vmul.f32 %v3831_v43, %v3827_v55 }
0x14d5   : > { %v2631_v62 = vmul.f32 %v3833_v60, %v3829_v56 }
0x14d6   : > { %v2632_v0 = vpack.c.bf16 %v2630_v61, %v2630_v61 }
0x14d7   : > { %v2633_v2 = vpack.c.bf16 %v2631_v62, %v2631_v62 }
0x14d8   : > { %3645 = vmatmul.mubr.msk.bf16.vlgmr.msra.gmra.mrb[48].mxu1 %vm2609_vm6, %v2632_v0 }
0x14d9   : > { %3651 = vmatmul.mubr.msk.bf16.vlgmr.msra.gmra.mrb[52].mxu0 %vm2609_vm6, %v2633_v2  ;;  %3655 = vmatpush3.bf16.msra.mxu1 %v3770_v63 }
0x14da   : > { %3661 = vmatpush3.bf16.msra.mxu0 %v3771_v1  ;;  %3656 = vmatprep.mubr.msk.bf16.mxu1 %vm3905_vm1, %v3904_v15 }
0x14db   : > { %3662 = vmatprep.mubr.msk.bf16.mxu0 %vm3905_vm1, %v3904_v15  ;;  %3666 = vmatprep.subr.bf16.mxu1 %v3904_v15 }
0x14dc   : > { %3674 = vmatprep.subr.bf16.mxu0 %v3904_v15 }
0x15ab   : > { %v2677_v3 = vpop.f32.mrb[48].mxu1 }
0x15ac   : > { %v2729_v4 = vpack.c.bf16 %v2677_v3, %v2677_v3  ;;  %v2723_v5 = vpop.f32.mrb[52].mxu0  ;;  %v3646_v6 = vpop.f32.mrb[49].mxu1  ;;  %v3359_v3 = vld [vmem:[%s4616_s20 + $0x1] ss:$0 sm:$0xff] }
0x15ad   : > { %v2730_v8 = vpack.c.bf16 %v2723_v5, %v2723_v5  ;;  %v3652_v9 = vpop.f32.mrb[53].mxu0  ;;  %v2680_v11 = vpop.f32.mrb[50].mxu1 }
0x15ae   : > { %v2726_v12 = vpop.f32.mrb[54].mxu0  ;;  %v3647_v13 = vpop.f32.mrb[51].mxu1  ;;  %3657 = vmatmul.mubr.msk.bf16.vlgmr.msra.gmra.mrb[52].mxu1 %vm1412_vm3, %v2729_v4 }
0x15af   : > { %v3653_v14 = vpop.f32.mrb[55].mxu0  ;;  %3663 = vmatmul.mubr.msk.bf16.vlgmr.msra.gmra.mrb[56].mxu0 %vm1412_vm3, %v2730_v8  ;;  %3670 = vmatprep.mubr.msk.bf16.mxu1 %vm3905_vm1, %v3904_v15 }
0x15b0   : > { %3682 = vmatprep.mubr.msk.bf16.mxu0 %vm3905_vm1, %v3904_v15  ;;  %3667 = vmatpush3.bf16.msra.mxu1 %v3772_v37 }
0x15b1   : > { %3668 = vmatprep.subr.bf16.mxu1 %v3904_v15  ;;  %3675 = vmatpush3.bf16.msra.mxu0 %v3774_v10 }
0x15b2   : > { %3676 = vmatprep.subr.bf16.mxu0 %v3904_v15 }
0x15b5   : > { %3677 = vmatpush3.bf16.msra.mxu0 %v3775_v49 }
0x15b6   : > { %3678 = vmatprep.subr.bf16.mxu0 %v3904_v15 }
0x15b9   : > { %3679 = vmatpush3.bf16.msra.mxu0 %v3776_v50 }
0x15ba   : > { %3680 = vmatprep.subr.bf16.mxu0 %v3904_v15 }
0x15bd   : > { %3681 = vmatpush3.bf16.msra.mxu0 %v3777_v51 }
0x1681   : > { %v2779_v16 = vpop.f32.mrb[52].mxu1 }
0x1682   : > { %v2834_v17 = vsel %vm970_vm2, %v2779_v16, 0.0  ;;  %v2828_v18 = vpop.f32.mrb[56].mxu0  ;;  %v3658_v19 = vpop.f32.mrb[53].mxu1 }
0x1683   : > { %v2835_v20 = vsel %vm970_vm2, %v2828_v18, 0.0  ;;  %v3664_v21 = vpop.f32.mrb[57].mxu0  ;;  %v2782_v22 = vpop.f32.mrb[54].mxu1  ;;  %v3778_v18 = vld [vmem:[%s4622_s26] sm:$0xff]   ;;  %v3779_v19 = vld [vmem:[%s4622_s26 + $0x8] sm:$0xff]  }
0x1684   : > { %v2836_v23 = vadd.f32 %v2835_v20, %v2834_v17  ;;  %v2831_v24 = vpop.f32.mrb[58].mxu0  ;;  %v3659_v25 = vpop.f32.mrb[55].mxu1 }
0x1685   : > { %v3665_v26 = vpop.f32.mrb[59].mxu0  ;;  %v3360_v24 = vld [vmem:[%s4620_s24] ss:$0 sm:$0xff] }
0x1686   : > { %v2837_v28 = vadd.f32 %v2836_v23, %v4368_v33  ;;  %v3773_v33 = vld [vmem:[%s4613_s17 + $0x18] sm:$0xff]   ;;  %v3361_v26 = vld [vmem:[%s4621_s25] ss:$0 sm:$0xff] }
0x1687   : > { %3669 = vmatpush3.bf16.msra.mxu1 %v3773_v33  ;;  %v3086_v33 = vld [vmem:[%s4623_s27] sm:$0x1] }
0x1688   : > { %v2846_v29 = vadd.f32 %v3331_v27, %v2837_v28  ;;  %3686 = vmatprep.subr.bf16.mxu1 %v3904_v15 }
0x168a   : > { %v2851_v30 = vsel %vm970_vm2, %v2846_v29, 0.0 }
0x168b   : > { %2852 = vadd.xlane.f32.xlu0 %v2851_v30 }
0x1718   : > { %v2853_v31 = vpop.xlane.xlu0 %2852 }
0x1719   : > { %v2854_v32 = vmul.f32 0.03125, %v2853_v31 }
0x171b   : > { %v2855_v34 = vsub.f32 %v2846_v29, %v2854_v32 }
0x171d   : > { %v2856_v35 = vmul.f32 %v2855_v34, %v2855_v34 }
0x171f   : > { %v2857_v36 = vsel %vm970_vm2, %v2856_v35, 0.0 }
0x1720   : > { %2858 = vadd.xlane.f32.xlu1 %v2857_v36 }
0x17ad   : > { %v2859_v38 = vpop.xlane.xlu1 %2858 }
0x17ae   : > { %v2860_v39 = vmul.f32 0.03125, %v2859_v38 }
0x17b0   : > { %v2861_v40 = vadd.f32 1e-05, %v2860_v39 }
0x17b2   : > { %3834 = vrsqrt.f32 %v2861_v40 }
0x17bc   : > { %v3835_v42 = vpop.eup %3834 }
0x17bd   : > { %v2863_v45 = vmul.f32 %v3835_v42, %v2855_v34 }
0x17bf   : > { %v2870_v47 = vmul.f32 %v3334_v44, %v2863_v45 }
0x17c1   : > { %v2877_v7 = vadd.f32 %v3335_v46, %v2870_v47 }
0x17c3   : > { %v2878_v48 = vpack.c.bf16 %v2877_v7, %v2877_v7 }
0x17c5   : > { %3671 = vmatmul.mubr.msk.bf16.vlgmr.msra.gmra.mrb[56].mxu1 %vm970_vm2, %v2878_v48 }
0x17c6   : > { %3690 = vmatprep.mubr.msk.bf16.mxu1 %vm3905_vm1, %v3904_v15  ;;  %3687 = vmatpush3.bf16.msra.mxu1 %v3778_v18 }
0x17c7   : > { %3688 = vmatprep.subr.bf16.mxu1 %v3904_v15 }
0x17ca   : > { %3689 = vmatpush3.bf16.msra.mxu1 %v3779_v19 }
0x1898   : > { %v2941_v53 = vpop.f32.mrb[56].mxu1 }
0x1899   : > { %v2942_v54 = vadd.f32 %v3341_v52, %v2941_v53  ;;  %v3672_v55 = vpop.f32.mrb[57].mxu1 }
0x189a   : > { %v2944_v56 = vpop.f32.mrb[58].mxu1 }
0x189b   : > { %v2948_v57 = vmul.f32 0.044715, %v2942_v54  ;;  %v3673_v41 = vpop.f32.mrb[59].mxu1  ;;  %v2947_v62 = vmul.f32 0.5, %v2942_v54 }
0x189d   : > { %v2949_v58 = vmul.f32 %v2948_v57, %v2942_v54 }
0x189f   : > { %v2950_v59 = vmul.f32 %v2949_v58, %v2942_v54 }
0x18a1   : > { %v2951_v43 = vadd.f32 %v2950_v59, %v2942_v54 }
0x18a3   : > { %v2952_v60 = vmul.f32 0.7978846, %v2951_v43 }
0x18a5   : > { %3836 = vtanh.f32 %v2952_v60 }
0x18af   : > { %v3837_v61 = vpop.eup %3836 }
0x18b0   : > { %v2954_v63 = vadd.f32 1.0, %v3837_v61 }
0x18b2   : > { %v2955_v0 = vmul.f32 %v2954_v63, %v2947_v62 }
0x18b4   : > { %v2956_v1 = vpack.c.bf16 %v2955_v0, %v2955_v0 }
0x18b6   : > { %3683 = vmatmul.mubr.msk.bf16.vlgmr.msra.gmra.mrb[60].mxu0 %vm1933_vm4, %v2956_v1 }
0x1989   : > { %v3027_v2 = vpop.f32.mrb[60].mxu0 }
0x198a   : > { %v3033_v4 = vadd.f32 %v3027_v2, %v2846_v29  ;;  %v3684_v5 = vpop.f32.mrb[61].mxu0 }
0x198b   : > { %v3030_v6 = vpop.f32.mrb[62].mxu0 }
0x198c   : > { %v3685_v8 = vpop.f32.mrb[63].mxu0  ;;  %v3042_v9 = vadd.f32 %v3359_v3, %v3033_v4 }
0x198e   : > { %v3045_v11 = vsel %vm970_vm2, %v3042_v9, 0.0 }
0x198f   : > { %3046 = vadd.xlane.f32.xlu0 %v3045_v11 }
0x1a1c   : > { %v3047_v12 = vpop.xlane.xlu0 %3046 }
0x1a1d   : > { %v3048_v13 = vmul.f32 0.03125, %v3047_v12 }
0x1a1f   : > { %v3049_v14 = vsub.f32 %v3042_v9, %v3048_v13 }
0x1a21   : > { %v3050_v16 = vmul.f32 %v3049_v14, %v3049_v14 }
0x1a23   : > { %v3051_v17 = vsel %vm970_vm2, %v3050_v16, 0.0 }
0x1a24   : > { %3052 = vadd.xlane.f32.xlu1 %v3051_v17 }
0x1ab1   : > { %v3053_v20 = vpop.xlane.xlu1 %3052 }
0x1ab2   : > { %v3054_v21 = vmul.f32 0.03125, %v3053_v20 }
0x1ab4   : > { %v3055_v22 = vadd.f32 1e-05, %v3054_v21 }
0x1ab6   : > { %3838 = vrsqrt.f32 %v3055_v22 }
0x1ac0   : > { %v3839_v23 = vpop.eup %3838 }
0x1ac1   : > { %v3057_v25 = vmul.f32 %v3839_v23, %v3049_v14 }
0x1ac3   : > { %v3064_v27 = vmul.f32 %v3360_v24, %v3057_v25 }
0x1ac5   : > { %v3071_v28 = vadd.f32 %v3361_v26, %v3064_v27 }
0x1ac7   : > { %v3072_v15 = vsel %vm970_vm2, %v3071_v28, 0.0 }
0x1ac8   : > { %v3073_v29 = vrot.slane %v3072_v15, 4 }
0x1aca   : > { %v3074_v30 = vadd.f32 %v3073_v29, %v3072_v15 }
0x1acc   : > { %v3075_v31 = vrot.slane %v3074_v30, 2 }
0x1ace   : > { %v3076_v32 = vadd.f32 %v3075_v31, %v3074_v30 }
0x1ad0   : > { %v3077_v34 = vrot.slane %v3076_v32, 1 }
0x1ad2   : > { %v3078_v35 = vadd.f32 %v3077_v34, %v3076_v32 }
0x1ad4   : > { %v3080_v36 = vmul.f32 0.125, %v3078_v35 }
0x1ad6   : > { %v3081_v37 = vpack.c.bf16 %v3080_v36, %v3080_v36 }
0x1ad8   : > { %3691 = vmatmul.mubr.msk.bf16.vlgmr.msra.gmra.mrb[60].mxu1 %vm970_vm2, %v3081_v37 }
0x1bab   : > { %v3136_v38 = vpop.f32.mrb[60].mxu1 }
0x1bac   : > { %v3137_v39 = vadd.f32 %v3136_v38, %v3086_v33  ;;  %v3692_v40 = vpop.f32.mrb[61].mxu1 }
0x1bad   : > { %v3139_v42 = vpop.f32.mrb[62].mxu1 }
0x1bae   : > { %v3693_v44 = vpop.f32.mrb[63].mxu1  ;;  %3143 = vst.msk [vmem:[%s837_s10] sm:$0x1] %vm3142_vm7, %v3137_v39 }
0x1baf   : > { %3853 = shalt.err (!%p3850_p3)
}
0x1bb0   : > { %s3854_s11 = scalar_lea.hbm %s4554_s2, 16  ;;  %s3858_s1 = scalar_lea.hbm %s4685_s0, 32 }
0x1bb1   : > { %p3855_p4 = scmp.ne.s32.totalorder %s4554_s2, %s3854_s11  ;;  %p3859_p9 = scmp.lt.u32.totalorder %s4554_s2, %s4685_s0 }
0x1bb2   : > { %p3860_p10 = scmp.lt.u32.totalorder %s3858_s1, %s3854_s11  ;;  %p3862_p12 = scmp.lt.u32.totalorder %s3854_s11, %s4554_s2 }
0x1bb3   : > { %p3856_p7 = pnand %p3855_p4, %p4090_p5 }
0x1bb4   : > { %p3861_p11 = por %p3860_p10, %p3859_p9 }
0x1bb5   : > { %p3857_p8 = pneg %p3856_p7 }
0x1bb6   : > { %p3863_p13 = por %p3862_p12, %p3861_p11 }
0x1bb8   : > { %p3864_p0 = pnand %p3863_p13, %p3857_p8 }
0x1bba   : > { %3867 = shalt.err (!%p3864_p0)
}
0x1bbb   : > { %3694 = dma.vmem_to_hbm [thread:$0]  (%p4090_p5), %s4556_s28, 16, %s4554_s2, %s3145_s3  }
0x1bbc PF: > { %s4686_s29 = sld [smem:[#allocation7_spill]]  ;;  %s4687_s30 = sld [smem:[#allocation5_spill]] }
0x1bc2   : > { %p3700_p1 = scmp.ge.s32.totalorder %s4686_s29, 2  ;;  %s3169_s10 = sand.u32 1, %s4687_s30  }
0x1bc3   : > { %s3170_s8 = scalar_lea.sflag [#allocation3], %s3169_s10 }
0x1bc4   : > { %p3697_p2 = pnand %p3700_p1, %p4094_p6 }
0x1bc6   : > { %3885 = dma.done.wait (!%p3697_p2), %s3170_s8, 16  }
0x1bc7   : > { %3887 = vsyncadd (!%p3697_p2), %s3170_s8, 4294967280  ;;  %s4689_s30 = sld [smem:[#allocation8_spill]]  ;;  %s4690_s11 = sld [smem:[#allocation6_spill]] }
0x1bc8   : > { %s4691_s9 = sld [smem:[#allocation9_spill]]  ;;  %s4692_s8 = smov %s3894_s5 }
0x1bcd   : > { %p38_p3 = scmp.ge.s32.totalorder %s4689_s30, 4   ;;  %s4693_s5 = smov %s4690_s11 }
0x1bcf   :  { %40 = sbr.rel (!%p38_p3) target bundleno = 18 (0x12), region = 180 }
0x1bd6   :  { %3174 = vsyncpa [#allocation3], 1 }
0x1bd7   :  { %3176 = vsyncpa [#allocation3 + $0x1], 1 }

</bundles_post_ra>
